<compile_context>
chip_gen: v7x
topology: tpu7x:2x2x1
jax: 0.10.0
libtpu: 0.0.40
codegen_flags: <defaults>
</compile_context>

<pallas_src>
import functools

import jax
import jax.numpy as jnp
from jax.experimental import pallas as pl
from jax.experimental.pallas import tpu as pltpu

LANE = 128
SUBLANE = 8


def _round_up(x, m):
    return ((x + m - 1) // m) * m


# -----------------------------------------------------------------------------
# Kernel: one grid step == tb batch elements.
# -----------------------------------------------------------------------------
def _cnp_kernel(
    pk_ref,                                   # (tb, n_obs*obs_dim + n_tar*input_dim) f32
    ew0_ref, ew1_ref, ew2_ref,                # encoder weights
    dw0r_ref, dw0t_ref, dw1_ref, dw2_ref,     # decoder weights
    b_ref,                                    # (8, h_pad) packed biases, f32
    pred_ref,                                 # (n_tar, tb, out2) f32
    rep_ref,                                  # (tb, h_pad) f32
    *, tb, n_obs, n_tar, obs_dim, input_dim, out2,
):
    f32 = jnp.float32
    cdt = ew1_ref.dtype                       # MXU input dtype (bf16 or f32)
    h_pad = ew1_ref.shape[1]

    pk = pk_ref[...]                          # packed inputs, f32

    eb0 = b_ref[0:1, :]
    eb1 = b_ref[1:2, :]
    eb2 = b_ref[2:3, :]
    db0 = b_ref[3:4, :]
    db1 = b_ref[4:5, :]
    db2 = b_ref[5:6, :out2]

    ew0 = ew0_ref[...]                        # (obs_dim, h_pad)  f32 (VPU operand)
    dw0t = dw0t_ref[...]                      # (input_dim, h_pad) f32 (VPU operand)

    # Hoisted broadcasts (JAX does not CSE broadcast_in_dim inside loops).
    eb0_full = jnp.broadcast_to(eb0, (tb, h_pad))
    ew0_rows = [jnp.broadcast_to(ew0[k:k + 1, :], (tb, h_pad)) for k in range(obs_dim)]
    dw0t_rows = [jnp.broadcast_to(dw0t[k:k + 1, :], (tb, h_pad)) for k in range(input_dim)]

    # ----- encoder layer 0 on the VPU (K = obs_dim is far too small for MXU) --
    # row order is point-major: row = o*tb + b.
    rows = []
    for o in range(n_obs):
        acc = eb0_full
        for k in range(obs_dim):
            c = o * obs_dim + k
            acc = acc + pk[:, c:c + 1] * ew0_rows[k]          # (tb,1)*(tb,h_pad)
        rows.append(jnp.maximum(acc, 0.0))
    h = jnp.concatenate(rows, axis=0).astype(cdt)             # (n_obs*tb, h_pad)

    # ----- encoder layers 1, 2 on the MXU ------------------------------------
    h = jnp.dot(h, ew1_ref[...], preferred_element_type=f32) + eb1
    h = jnp.maximum(h, 0.0).astype(cdt)
    enc = jnp.dot(h, ew2_ref[...], preferred_element_type=f32) + eb2
    # enc: (n_obs*tb, h_pad); padded lanes are exactly zero.

    # ----- per-batch mean over observations: leading-axis sum (pure VPU) ------
    rep = enc.reshape(n_obs, tb, h_pad).sum(axis=0) * (1.0 / n_obs)   # (tb, h_pad)
    rep_ref[...] = rep.astype(rep_ref.dtype)

    # ----- decoder -------------------------------------------------------------
    # cat([rep_repeated, tar], -1) @ W0 == rep @ W0[:H] + tar @ W0[H:]
    rep_proj = jnp.dot(rep.astype(cdt), dw0r_ref[...],
                       preferred_element_type=f32) + db0              # (tb, h_pad)

    tar_off = n_obs * obs_dim
    drows = []
    for t in range(n_tar):
        acc = rep_proj
        for k in range(input_dim):
            c = tar_off + t * input_dim + k
            acc = acc + pk[:, c:c + 1] * dw0t_rows[k]
        drows.append(jnp.maximum(acc, 0.0))
    d = jnp.concatenate(drows, axis=0).astype(cdt)                    # (n_tar*tb, h_pad)

    d = jnp.dot(d, dw1_ref[...], preferred_element_type=f32) + db1
    d = jnp.maximum(d, 0.0).astype(cdt)
    pred = jnp.dot(d, dw2_ref[...], preferred_element_type=f32) + db2 # (n_tar*tb, out2)

    pred_ref[...] = pred.reshape(n_tar, tb, out2).astype(pred_ref.dtype)
    # TODO(synk): PyTorch's runtime isnan()/print/exit() debug guard on pred is
    # host-side control flow and is not reproduced; inspect the returned pred
    # (first B rows only) in the wrapper if that guard matters.


# -----------------------------------------------------------------------------
# Wrapper
# -----------------------------------------------------------------------------
def cnp_forward(obs, tar, params, *, tb=None, compute_dtype=jnp.bfloat16,
                vmem_limit_bytes=None):
    """obs: (B, n_obs, input_dim+output_dim), tar: (B, n_tar, input_dim).

    Returns (pred (B, n_tar, 2*output_dim), encoded_rep (B, 1, hidden))."""
    B, n_obs, obs_dim = obs.shape
    _, n_tar, input_dim = tar.shape
    H = params["ew1"].shape[0]
    out2 = params["dw2"].shape[1]             # 2 * output_dim
    h_pad = _round_up(H, LANE)
    assert out2 <= h_pad, "2*output_dim must not exceed round_up(hidden,128)"

    # Per-generation scoped-VMEM limit (v5e/v6e: 128 MiB physical -> 96 MiB,
    # v7x: 64 MiB physical -> 48 MiB).  v5e's 16 MiB default is never relied on.
    if vmem_limit_bytes is None:
        try:
            cap = int(pltpu.get_tpu_info().vmem_capacity_bytes)
        except Exception:
            cap = 64 * 1024 * 1024
        vmem_limit_bytes = min(96 * 1024 * 1024, (cap * 3) // 4)
    vmem_limit_bytes = int(vmem_limit_bytes)

    # Batch-block size: aim for >= 2 grid steps (both v7x TensorCores busy) and
    # stay inside a byte-based VMEM budget (activation slabs + output buffers).
    if tb is None:
        tb = max(SUBLANE, min(512, _round_up(-(-B // 2), SUBLANE)))
        per_row_bytes = ((n_obs + n_tar) * h_pad * 4 * 3      # live f32 activation slabs
                         + n_tar * LANE * 4 * 2               # double-buffered pred block
                         + h_pad * 4 * 2)                     # double-buffered rep block
        cap_rows = max(SUBLANE,
                       ((vmem_limit_bytes // 2) // per_row_bytes) // SUBLANE * SUBLANE)
        tb = min(tb, cap_rows)
    assert tb % SUBLANE == 0, "tb must be a multiple of 8 (sublane count)"

    b_pad = _round_up(B, tb)
    grid = b_pad // tb
    cdt = compute_dtype

    def pad_to(w, rows, cols):
        r, c = w.shape
        return jnp.pad(w, ((0, rows - r), (0, cols - c)))

    # Layer-0 operands stay f32 (VPU); MXU operands go to compute dtype.
    ew0 = pad_to(params["ew0"], obs_dim, h_pad).astype(jnp.float32)
    ew1 = pad_to(params["ew1"], h_pad, h_pad).astype(cdt)
    ew2 = pad_to(params["ew2"], h_pad, h_pad).astype(cdt)
    dw0r = pad_to(params["dw0r"], h_pad, h_pad).astype(cdt)
    dw0t = pad_to(params["dw0t"], input_dim, h_pad).astype(jnp.float32)
    dw1 = pad_to(params["dw1"], h_pad, h_pad).astype(cdt)
    dw2 = pad_to(params["dw2"], h_pad, out2).astype(cdt)

    def biasrow(b):
        return pad_to(b.reshape(1, -1).astype(jnp.float32), 1, h_pad)

    biases = jnp.concatenate(
        [biasrow(params["eb0"]), biasrow(params["eb1"]), biasrow(params["eb2"]),
         biasrow(params["db0"]), biasrow(params["db1"]), biasrow(params["db2"]),
         jnp.zeros((2, h_pad), jnp.float32)], axis=0)          # (8, h_pad) single tile

    # Pack obs+tar lane-dense: one row per batch element.
    if b_pad != B:
        obs = jnp.pad(obs, ((0, b_pad - B), (0, 0), (0, 0)))
        tar = jnp.pad(tar, ((0, b_pad - B), (0, 0), (0, 0)))
    packed = jnp.concatenate(
        [obs.reshape(b_pad, n_obs * obs_dim),
         tar.reshape(b_pad, n_tar * input_dim)], axis=-1).astype(jnp.float32)
    w_in = n_obs * obs_dim + n_tar * input_dim

    weights = (ew0, ew1, ew2, dw0r, dw0t, dw1, dw2, biases)
    # Constant index maps -> loaded once, VMEM-resident across all grid steps.
    weight_specs = [pl.BlockSpec(w.shape, lambda g: (0, 0)) for w in weights]

    grid_spec = pltpu.PrefetchScalarGridSpec(
        num_scalar_prefetch=0,
        grid=(grid,),
        in_specs=[pl.BlockSpec((tb, w_in), lambda g: (g, 0)), *weight_specs],
        out_specs=[
            pl.BlockSpec((n_tar, tb, out2), lambda g: (0, g, 0)),   # pred (t-major)
            pl.BlockSpec((tb, h_pad), lambda g: (g, 0)),            # rep (lane-dense)
        ],
    )

    kernel = functools.partial(_cnp_kernel, tb=tb, n_obs=n_obs, n_tar=n_tar,
                               obs_dim=obs_dim, input_dim=input_dim, out2=out2)

    pred_tb, rep_slab = pl.pallas_call(
        kernel,
        grid_spec=grid_spec,
        out_shape=(
            jax.ShapeDtypeStruct((n_tar, b_pad, out2), jnp.float32),
            jax.ShapeDtypeStruct((b_pad, h_pad), jnp.float32),
        ),
        compiler_params=pltpu.CompilerParams(
            dimension_semantics=("parallel",),
            vmem_limit_bytes=vmem_limit_bytes,
        ),
    )(packed, *weights)

    pred = jnp.transpose(pred_tb, (1, 0, 2))[:B]                # (B, n_tar, out2)
    encoded_rep = rep_slab[:B, :H].reshape(B, 1, H)
    return pred, encoded_rep


# -----------------------------------------------------------------------------
# Deterministic parameter init (mimics nn.Linear uniform(+-1/sqrt(fan_in)))
# -----------------------------------------------------------------------------
def init_params(key, input_dim, hidden_dim, output_dim):
    ks = jax.random.split(key, 14)

    def linear(kw, kb, fan_in, fan_out):
        bound = 1.0 / jnp.sqrt(fan_in)
        w = jax.random.uniform(kw, (fan_in, fan_out), jnp.float32, -bound, bound)
        b = jax.random.uniform(kb, (1, fan_out), jnp.float32, -bound, bound)
        return w, b

    p = {}
    p["ew0"], p["eb0"] = linear(ks[0], ks[1], input_dim + output_dim, hidden_dim)
    p["ew1"], p["eb1"] = linear(ks[2], ks[3], hidden_dim, hidden_dim)
    p["ew2"], p["eb2"] = linear(ks[4], ks[5], hidden_dim, hidden_dim)

    dw0, db0 = linear(ks[6], ks[7], input_dim + hidden_dim, hidden_dim)
    # torch concat order is [rep, tar] -> split decoder layer-0 rows accordingly.
    p["dw0r"] = dw0[:hidden_dim]
    p["dw0t"] = dw0[hidden_dim:]
    p["db0"] = db0
    p["dw1"], p["db1"] = linear(ks[8], ks[9], hidden_dim, hidden_dim)
    p["dw2"], p["db2"] = linear(ks[10], ks[11], hidden_dim, 2 * output_dim)
    return p


# Pure-JAX reference (correctness check).
def cnp_reference(obs, tar, p):
    h = jax.nn.relu(obs @ p["ew0"] + p["eb0"])
    h = jax.nn.relu(h @ p["ew1"] + p["eb1"])
    enc = h @ p["ew2"] + p["eb2"]
    rep = jnp.mean(enc, axis=1, keepdims=True)                       # (B, 1, H)
    rep_rep = jnp.repeat(rep, tar.shape[1], axis=1)                  # (B, T, H)
    d = jax.nn.relu(rep_rep @ p["dw0r"] + tar @ p["dw0t"] + p["db0"])
    d = jax.nn.relu(d @ p["dw1"] + p["db1"])
    pred = d @ p["dw2"] + p["db2"]
    return pred, rep


if __name__ == "__main__":
    # Small CNP-consistent shapes. B=12 exercises a 2-step grid and tail padding.
    input_dim, hidden_dim, output_dim = 1, 32, 1
    B, n_obs, n_tar = 12, 8, 8

    key = jax.random.PRNGKey(0)
    k_obs, k_tar, k_par = jax.random.split(key, 3)

    obs = jax.random.normal(k_obs, (B, n_obs, input_dim + output_dim), jnp.float32)
    tar = jax.random.normal(k_tar, (B, n_tar, input_dim), jnp.float32)
    params = init_params(k_par, input_dim, hidden_dim, output_dim)

    ref_pred, ref_rep = cnp_reference(obs, tar, params)

    # f32 compute path, explicit tb=8 (tight tolerance).
    pred, encoded_rep = cnp_forward(obs, tar, params, tb=8,
                                    compute_dtype=jnp.float32)
    jax.block_until_ready((pred, encoded_rep))
    assert pred.shape == (B, n_tar, 2 * output_dim)
    assert encoded_rep.shape == (B, 1, hidden_dim)
    assert jnp.allclose(pred, ref_pred, atol=1e-4, rtol=1e-4)
    assert jnp.allclose(encoded_rep, ref_rep, atol=1e-4, rtol=1e-4)

    # Default path: bf16 MXU inputs, f32 accumulation, auto tb (loose tolerance).
    pred_bf, rep_bf = cnp_forward(obs, tar, params)
    jax.block_until_ready((pred_bf, rep_bf))
    assert pred_bf.shape == (B, n_tar, 2 * output_dim)
    assert rep_bf.shape == (B, 1, hidden_dim)
    assert jnp.allclose(pred_bf, ref_pred, atol=1e-1, rtol=1e-1)
    assert jnp.allclose(rep_bf, ref_rep, atol=1e-1, rtol=1e-1)

    print("KERNEL_OK")
</pallas_src>

<mosaic_0001>
module attributes {stable_mosaic.version = 11 : i64} {
  func.func @_cnp_kernel(%arg0: i32, %arg1: memref<8x24xf32, #tpu.memory_space<vmem>>, %arg2: memref<2x128xf32, #tpu.memory_space<vmem>>, %arg3: memref<128x128xf32, #tpu.memory_space<vmem>>, %arg4: memref<128x128xf32, #tpu.memory_space<vmem>>, %arg5: memref<128x128xf32, #tpu.memory_space<vmem>>, %arg6: memref<1x128xf32, #tpu.memory_space<vmem>>, %arg7: memref<128x128xf32, #tpu.memory_space<vmem>>, %arg8: memref<128x2xf32, #tpu.memory_space<vmem>>, %arg9: memref<8x128xf32, #tpu.memory_space<vmem>>, %arg10: memref<8x8x2xf32, #tpu.memory_space<vmem>>, %arg11: memref<8x128xf32, #tpu.memory_space<vmem>>) attributes {dimension_semantics = [#tpu.dimension_semantics<parallel>], iteration_bounds = array<i64: 2>, scalar_prefetch = 0 : i64, scratch_operands = 0 : i64, tpu.core_type = #tpu.core_type<tc>, window_params = [{transform_indices = @transform_0, window_bounds = array<i64: 8, 24>}, {pipeline_mode = #tpu.pipeline_mode<synchronous>, transform_indices = @transform_1, window_bounds = array<i64: 2, 128>}, {pipeline_mode = #tpu.pipeline_mode<synchronous>, transform_indices = @transform_2, window_bounds = array<i64: 128, 128>}, {pipeline_mode = #tpu.pipeline_mode<synchronous>, transform_indices = @transform_3, window_bounds = array<i64: 128, 128>}, {pipeline_mode = #tpu.pipeline_mode<synchronous>, transform_indices = @transform_4, window_bounds = array<i64: 128, 128>}, {pipeline_mode = #tpu.pipeline_mode<synchronous>, transform_indices = @transform_5, window_bounds = array<i64: 1, 128>}, {pipeline_mode = #tpu.pipeline_mode<synchronous>, transform_indices = @transform_6, window_bounds = array<i64: 128, 128>}, {pipeline_mode = #tpu.pipeline_mode<synchronous>, transform_indices = @transform_7, window_bounds = array<i64: 128, 2>}, {pipeline_mode = #tpu.pipeline_mode<synchronous>, transform_indices = @transform_8, window_bounds = array<i64: 8, 128>}, {transform_indices = @transform_9, window_bounds = array<i64: 8, 8, 2>}, {transform_indices = @transform_10, window_bounds = array<i64: 8, 128>}]} {
    %c0 = arith.constant 0 : index
    %c0_0 = arith.constant 0 : index
    %0 = vector.load %arg1[%c0, %c0_0] : memref<8x24xf32, #tpu.memory_space<vmem>>, vector<8x24xf32>
    %c0_1 = arith.constant 0 : index
    %c0_2 = arith.constant 0 : index
    %1 = vector.load %arg9[%c0_1, %c0_2] : memref<8x128xf32, #tpu.memory_space<vmem>>, vector<1x128xf32>
    %c1 = arith.constant 1 : index
    %c0_3 = arith.constant 0 : index
    %2 = vector.load %arg9[%c1, %c0_3] : memref<8x128xf32, #tpu.memory_space<vmem>>, vector<1x128xf32>
    %c2 = arith.constant 2 : index
    %c0_4 = arith.constant 0 : index
    %3 = vector.load %arg9[%c2, %c0_4] : memref<8x128xf32, #tpu.memory_space<vmem>>, vector<1x128xf32>
    %c3 = arith.constant 3 : index
    %c0_5 = arith.constant 0 : index
    %4 = vector.load %arg9[%c3, %c0_5] : memref<8x128xf32, #tpu.memory_space<vmem>>, vector<1x128xf32>
    %c4 = arith.constant 4 : index
    %c0_6 = arith.constant 0 : index
    %5 = vector.load %arg9[%c4, %c0_6] : memref<8x128xf32, #tpu.memory_space<vmem>>, vector<1x128xf32>
    %c5 = arith.constant 5 : index
    %c0_7 = arith.constant 0 : index
    %6 = vector.load %arg9[%c5, %c0_7] : memref<8x128xf32, #tpu.memory_space<vmem>>, vector<1x2xf32>
    %c0_8 = arith.constant 0 : index
    %c0_9 = arith.constant 0 : index
    %7 = vector.load %arg2[%c0_8, %c0_9] : memref<2x128xf32, #tpu.memory_space<vmem>>, vector<2x128xf32>
    %c0_10 = arith.constant 0 : index
    %c0_11 = arith.constant 0 : index
    %8 = vector.load %arg6[%c0_10, %c0_11] : memref<1x128xf32, #tpu.memory_space<vmem>>, vector<1x128xf32>
    %9 = vector.shape_cast %1 : vector<1x128xf32> to vector<1x128xf32>
    %10 = vector.broadcast %9 : vector<1x128xf32> to vector<8x128xf32>
    %11 = vector.extract_strided_slice %7 {offsets = [0, 0], sizes = [1, 128], strides = [1, 1]} : vector<2x128xf32> to vector<1x128xf32>
    %12 = vector.shape_cast %11 : vector<1x128xf32> to vector<1x128xf32>
    %13 = vector.broadcast %12 : vector<1x128xf32> to vector<8x128xf32>
    %14 = vector.extract_strided_slice %7 {offsets = [1, 0], sizes = [1, 128], strides = [1, 1]} : vector<2x128xf32> to vector<1x128xf32>
    %15 = vector.shape_cast %14 : vector<1x128xf32> to vector<1x128xf32>
    %16 = vector.broadcast %15 : vector<1x128xf32> to vector<8x128xf32>
    %17 = vector.shape_cast %8 : vector<1x128xf32> to vector<1x128xf32>
    %18 = vector.broadcast %17 : vector<1x128xf32> to vector<8x128xf32>
    %19 = vector.extract_strided_slice %0 {offsets = [0, 0], sizes = [8, 1], strides = [1, 1]} : vector<8x24xf32> to vector<8x1xf32>
    %20 = vector.broadcast %19 : vector<8x1xf32> to vector<8x128xf32>
    %21 = arith.mulf %20, %13 : vector<8x128xf32>
    %22 = arith.addf %10, %21 : vector<8x128xf32>
    %23 = vector.extract_strided_slice %0 {offsets = [0, 1], sizes = [8, 1], strides = [1, 1]} : vector<8x24xf32> to vector<8x1xf32>
    %24 = vector.broadcast %23 : vector<8x1xf32> to vector<8x128xf32>
    %25 = arith.mulf %24, %16 : vector<8x128xf32>
    %26 = arith.addf %22, %25 : vector<8x128xf32>
    %cst = arith.constant 0.000000e+00 : f32
    %27 = vector.broadcast %cst : f32 to vector<8x128xf32>
    %28 = arith.maximumf %26, %27 : vector<8x128xf32>
    %29 = vector.extract_strided_slice %0 {offsets = [0, 2], sizes = [8, 1], strides = [1, 1]} : vector<8x24xf32> to vector<8x1xf32>
    %30 = vector.broadcast %29 : vector<8x1xf32> to vector<8x128xf32>
    %31 = arith.mulf %30, %13 : vector<8x128xf32>
    %32 = arith.addf %10, %31 : vector<8x128xf32>
    %33 = vector.extract_strided_slice %0 {offsets = [0, 3], sizes = [8, 1], strides = [1, 1]} : vector<8x24xf32> to vector<8x1xf32>
    %34 = vector.broadcast %33 : vector<8x1xf32> to vector<8x128xf32>
    %35 = arith.mulf %34, %16 : vector<8x128xf32>
    %36 = arith.addf %32, %35 : vector<8x128xf32>
    %cst_12 = arith.constant 0.000000e+00 : f32
    %37 = vector.broadcast %cst_12 : f32 to vector<8x128xf32>
    %38 = arith.maximumf %36, %37 : vector<8x128xf32>
    %39 = vector.extract_strided_slice %0 {offsets = [0, 4], sizes = [8, 1], strides = [1, 1]} : vector<8x24xf32> to vector<8x1xf32>
    %40 = vector.broadcast %39 : vector<8x1xf32> to vector<8x128xf32>
    %41 = arith.mulf %40, %13 : vector<8x128xf32>
    %42 = arith.addf %10, %41 : vector<8x128xf32>
    %43 = vector.extract_strided_slice %0 {offsets = [0, 5], sizes = [8, 1], strides = [1, 1]} : vector<8x24xf32> to vector<8x1xf32>
    %44 = vector.broadcast %43 : vector<8x1xf32> to vector<8x128xf32>
    %45 = arith.mulf %44, %16 : vector<8x128xf32>
    %46 = arith.addf %42, %45 : vector<8x128xf32>
    %cst_13 = arith.constant 0.000000e+00 : f32
    %47 = vector.broadcast %cst_13 : f32 to vector<8x128xf32>
    %48 = arith.maximumf %46, %47 : vector<8x128xf32>
    %49 = vector.extract_strided_slice %0 {offsets = [0, 6], sizes = [8, 1], strides = [1, 1]} : vector<8x24xf32> to vector<8x1xf32>
    %50 = vector.broadcast %49 : vector<8x1xf32> to vector<8x128xf32>
    %51 = arith.mulf %50, %13 : vector<8x128xf32>
    %52 = arith.addf %10, %51 : vector<8x128xf32>
    %53 = vector.extract_strided_slice %0 {offsets = [0, 7], sizes = [8, 1], strides = [1, 1]} : vector<8x24xf32> to vector<8x1xf32>
    %54 = vector.broadcast %53 : vector<8x1xf32> to vector<8x128xf32>
    %55 = arith.mulf %54, %16 : vector<8x128xf32>
    %56 = arith.addf %52, %55 : vector<8x128xf32>
    %cst_14 = arith.constant 0.000000e+00 : f32
    %57 = vector.broadcast %cst_14 : f32 to vector<8x128xf32>
    %58 = arith.maximumf %56, %57 : vector<8x128xf32>
    %59 = vector.extract_strided_slice %0 {offsets = [0, 8], sizes = [8, 1], strides = [1, 1]} : vector<8x24xf32> to vector<8x1xf32>
    %60 = vector.broadcast %59 : vector<8x1xf32> to vector<8x128xf32>
    %61 = arith.mulf %60, %13 : vector<8x128xf32>
    %62 = arith.addf %10, %61 : vector<8x128xf32>
    %63 = vector.extract_strided_slice %0 {offsets = [0, 9], sizes = [8, 1], strides = [1, 1]} : vector<8x24xf32> to vector<8x1xf32>
    %64 = vector.broadcast %63 : vector<8x1xf32> to vector<8x128xf32>
    %65 = arith.mulf %64, %16 : vector<8x128xf32>
    %66 = arith.addf %62, %65 : vector<8x128xf32>
    %cst_15 = arith.constant 0.000000e+00 : f32
    %67 = vector.broadcast %cst_15 : f32 to vector<8x128xf32>
    %68 = arith.maximumf %66, %67 : vector<8x128xf32>
    %69 = vector.extract_strided_slice %0 {offsets = [0, 10], sizes = [8, 1], strides = [1, 1]} : vector<8x24xf32> to vector<8x1xf32>
    %70 = vector.broadcast %69 : vector<8x1xf32> to vector<8x128xf32>
    %71 = arith.mulf %70, %13 : vector<8x128xf32>
    %72 = arith.addf %10, %71 : vector<8x128xf32>
    %73 = vector.extract_strided_slice %0 {offsets = [0, 11], sizes = [8, 1], strides = [1, 1]} : vector<8x24xf32> to vector<8x1xf32>
    %74 = vector.broadcast %73 : vector<8x1xf32> to vector<8x128xf32>
    %75 = arith.mulf %74, %16 : vector<8x128xf32>
    %76 = arith.addf %72, %75 : vector<8x128xf32>
    %cst_16 = arith.constant 0.000000e+00 : f32
    %77 = vector.broadcast %cst_16 : f32 to vector<8x128xf32>
    %78 = arith.maximumf %76, %77 : vector<8x128xf32>
    %79 = vector.extract_strided_slice %0 {offsets = [0, 12], sizes = [8, 1], strides = [1, 1]} : vector<8x24xf32> to vector<8x1xf32>
    %80 = vector.broadcast %79 : vector<8x1xf32> to vector<8x128xf32>
    %81 = arith.mulf %80, %13 : vector<8x128xf32>
    %82 = arith.addf %10, %81 : vector<8x128xf32>
    %83 = vector.extract_strided_slice %0 {offsets = [0, 13], sizes = [8, 1], strides = [1, 1]} : vector<8x24xf32> to vector<8x1xf32>
    %84 = vector.broadcast %83 : vector<8x1xf32> to vector<8x128xf32>
    %85 = arith.mulf %84, %16 : vector<8x128xf32>
    %86 = arith.addf %82, %85 : vector<8x128xf32>
    %cst_17 = arith.constant 0.000000e+00 : f32
    %87 = vector.broadcast %cst_17 : f32 to vector<8x128xf32>
    %88 = arith.maximumf %86, %87 : vector<8x128xf32>
    %89 = vector.extract_strided_slice %0 {offsets = [0, 14], sizes = [8, 1], strides = [1, 1]} : vector<8x24xf32> to vector<8x1xf32>
    %90 = vector.broadcast %89 : vector<8x1xf32> to vector<8x128xf32>
    %91 = arith.mulf %90, %13 : vector<8x128xf32>
    %92 = arith.addf %10, %91 : vector<8x128xf32>
    %93 = vector.extract_strided_slice %0 {offsets = [0, 15], sizes = [8, 1], strides = [1, 1]} : vector<8x24xf32> to vector<8x1xf32>
    %94 = vector.broadcast %93 : vector<8x1xf32> to vector<8x128xf32>
    %95 = arith.mulf %94, %16 : vector<8x128xf32>
    %96 = arith.addf %92, %95 : vector<8x128xf32>
    %cst_18 = arith.constant 0.000000e+00 : f32
    %97 = vector.broadcast %cst_18 : f32 to vector<8x128xf32>
    %98 = arith.maximumf %96, %97 : vector<8x128xf32>
    %99 = tpu.concatenate %28, %38, %48, %58, %68, %78, %88, %98 in 0 : vector<8x128xf32>, vector<8x128xf32>, vector<8x128xf32>, vector<8x128xf32>, vector<8x128xf32>, vector<8x128xf32>, vector<8x128xf32>, vector<8x128xf32> -> vector<64x128xf32>
    %c0_19 = arith.constant 0 : index
    %c0_20 = arith.constant 0 : index
    %100 = vector.load %arg3[%c0_19, %c0_20] : memref<128x128xf32, #tpu.memory_space<vmem>>, vector<128x128xf32>
    %cst_21 = arith.constant dense<0.000000e+00> : vector<64x128xf32>
    %101 = tpu.matmul %99, %100, %cst_21 {dimension_numbers = #tpu.dot_dimension_numbers<[1], [0], [0], [1], [0, 0, 1, 1], [], []>} : vector<64x128xf32>, vector<128x128xf32>, vector<64x128xf32> -> vector<64x128xf32>
    %102 = vector.broadcast %2 : vector<1x128xf32> to vector<64x128xf32>
    %103 = arith.addf %101, %102 : vector<64x128xf32>
    %cst_22 = arith.constant 0.000000e+00 : f32
    %104 = vector.broadcast %cst_22 : f32 to vector<64x128xf32>
    %105 = arith.maximumf %103, %104 : vector<64x128xf32>
    %c0_23 = arith.constant 0 : index
    %c0_24 = arith.constant 0 : index
    %106 = vector.load %arg4[%c0_23, %c0_24] : memref<128x128xf32, #tpu.memory_space<vmem>>, vector<128x128xf32>
    %cst_25 = arith.constant dense<0.000000e+00> : vector<64x128xf32>
    %107 = tpu.matmul %105, %106, %cst_25 {dimension_numbers = #tpu.dot_dimension_numbers<[1], [0], [0], [1], [0, 0, 1, 1], [], []>} : vector<64x128xf32>, vector<128x128xf32>, vector<64x128xf32> -> vector<64x128xf32>
    %108 = vector.broadcast %3 : vector<1x128xf32> to vector<64x128xf32>
    %109 = arith.addf %107, %108 : vector<64x128xf32>
    %110 = vector.shape_cast %109 : vector<64x128xf32> to vector<8x8x128xf32>
    %cst_26 = arith.constant dense<0.000000e+00> : vector<8x128xf32>
    %111 = vector.multi_reduction <add>, %110, %cst_26 [0] : vector<8x8x128xf32> to vector<8x128xf32>
    %cst_27 = arith.constant 1.250000e-01 : f32
    %112 = vector.broadcast %cst_27 : f32 to vector<8x128xf32>
    %113 = arith.mulf %111, %112 : vector<8x128xf32>
    %c0_28 = arith.constant 0 : index
    %c0_29 = arith.constant 0 : index
    %114 = vector.load %arg11[%c0_28, %c0_29] : memref<8x128xf32, #tpu.memory_space<vmem>>, vector<8x128xf32>
    tpu.vector_store %arg11[%c0_28, %c0_29], %113 {strides = array<i32>} : memref<8x128xf32, #tpu.memory_space<vmem>>, vector<8x128xf32>,
    %c0_30 = arith.constant 0 : index
    %c0_31 = arith.constant 0 : index
    %115 = vector.load %arg5[%c0_30, %c0_31] : memref<128x128xf32, #tpu.memory_space<vmem>>, vector<128x128xf32>
    %cst_32 = arith.constant dense<0.000000e+00> : vector<8x128xf32>
    %116 = tpu.matmul %113, %115, %cst_32 {dimension_numbers = #tpu.dot_dimension_numbers<[1], [0], [0], [1], [0, 0, 1, 1], [], []>} : vector<8x128xf32>, vector<128x128xf32>, vector<8x128xf32> -> vector<8x128xf32>
    %117 = vector.broadcast %4 : vector<1x128xf32> to vector<8x128xf32>
    %118 = arith.addf %116, %117 : vector<8x128xf32>
    %119 = vector.extract_strided_slice %0 {offsets = [0, 16], sizes = [8, 1], strides = [1, 1]} : vector<8x24xf32> to vector<8x1xf32>
    %120 = vector.broadcast %119 : vector<8x1xf32> to vector<8x128xf32>
    %121 = arith.mulf %120, %18 : vector<8x128xf32>
    %122 = arith.addf %118, %121 : vector<8x128xf32>
    %cst_33 = arith.constant 0.000000e+00 : f32
    %123 = vector.broadcast %cst_33 : f32 to vector<8x128xf32>
    %124 = arith.maximumf %122, %123 : vector<8x128xf32>
    %125 = vector.extract_strided_slice %0 {offsets = [0, 17], sizes = [8, 1], strides = [1, 1]} : vector<8x24xf32> to vector<8x1xf32>
    %126 = vector.broadcast %125 : vector<8x1xf32> to vector<8x128xf32>
    %127 = arith.mulf %126, %18 : vector<8x128xf32>
    %128 = arith.addf %118, %127 : vector<8x128xf32>
    %cst_34 = arith.constant 0.000000e+00 : f32
    %129 = vector.broadcast %cst_34 : f32 to vector<8x128xf32>
    %130 = arith.maximumf %128, %129 : vector<8x128xf32>
    %131 = vector.extract_strided_slice %0 {offsets = [0, 18], sizes = [8, 1], strides = [1, 1]} : vector<8x24xf32> to vector<8x1xf32>
    %132 = vector.broadcast %131 : vector<8x1xf32> to vector<8x128xf32>
    %133 = arith.mulf %132, %18 : vector<8x128xf32>
    %134 = arith.addf %118, %133 : vector<8x128xf32>
    %cst_35 = arith.constant 0.000000e+00 : f32
    %135 = vector.broadcast %cst_35 : f32 to vector<8x128xf32>
    %136 = arith.maximumf %134, %135 : vector<8x128xf32>
    %137 = vector.extract_strided_slice %0 {offsets = [0, 19], sizes = [8, 1], strides = [1, 1]} : vector<8x24xf32> to vector<8x1xf32>
    %138 = vector.broadcast %137 : vector<8x1xf32> to vector<8x128xf32>
    %139 = arith.mulf %138, %18 : vector<8x128xf32>
    %140 = arith.addf %118, %139 : vector<8x128xf32>
    %cst_36 = arith.constant 0.000000e+00 : f32
    %141 = vector.broadcast %cst_36 : f32 to vector<8x128xf32>
    %142 = arith.maximumf %140, %141 : vector<8x128xf32>
    %143 = vector.extract_strided_slice %0 {offsets = [0, 20], sizes = [8, 1], strides = [1, 1]} : vector<8x24xf32> to vector<8x1xf32>
    %144 = vector.broadcast %143 : vector<8x1xf32> to vector<8x128xf32>
    %145 = arith.mulf %144, %18 : vector<8x128xf32>
    %146 = arith.addf %118, %145 : vector<8x128xf32>
    %cst_37 = arith.constant 0.000000e+00 : f32
    %147 = vector.broadcast %cst_37 : f32 to vector<8x128xf32>
    %148 = arith.maximumf %146, %147 : vector<8x128xf32>
    %149 = vector.extract_strided_slice %0 {offsets = [0, 21], sizes = [8, 1], strides = [1, 1]} : vector<8x24xf32> to vector<8x1xf32>
    %150 = vector.broadcast %149 : vector<8x1xf32> to vector<8x128xf32>
    %151 = arith.mulf %150, %18 : vector<8x128xf32>
    %152 = arith.addf %118, %151 : vector<8x128xf32>
    %cst_38 = arith.constant 0.000000e+00 : f32
    %153 = vector.broadcast %cst_38 : f32 to vector<8x128xf32>
    %154 = arith.maximumf %152, %153 : vector<8x128xf32>
    %155 = vector.extract_strided_slice %0 {offsets = [0, 22], sizes = [8, 1], strides = [1, 1]} : vector<8x24xf32> to vector<8x1xf32>
    %156 = vector.broadcast %155 : vector<8x1xf32> to vector<8x128xf32>
    %157 = arith.mulf %156, %18 : vector<8x128xf32>
    %158 = arith.addf %118, %157 : vector<8x128xf32>
    %cst_39 = arith.constant 0.000000e+00 : f32
    %159 = vector.broadcast %cst_39 : f32 to vector<8x128xf32>
    %160 = arith.maximumf %158, %159 : vector<8x128xf32>
    %161 = vector.extract_strided_slice %0 {offsets = [0, 23], sizes = [8, 1], strides = [1, 1]} : vector<8x24xf32> to vector<8x1xf32>
    %162 = vector.broadcast %161 : vector<8x1xf32> to vector<8x128xf32>
    %163 = arith.mulf %162, %18 : vector<8x128xf32>
    %164 = arith.addf %118, %163 : vector<8x128xf32>
    %cst_40 = arith.constant 0.000000e+00 : f32
    %165 = vector.broadcast %cst_40 : f32 to vector<8x128xf32>
    %166 = arith.maximumf %164, %165 : vector<8x128xf32>
    %167 = tpu.concatenate %124, %130, %136, %142, %148, %154, %160, %166 in 0 : vector<8x128xf32>, vector<8x128xf32>, vector<8x128xf32>, vector<8x128xf32>, vector<8x128xf32>, vector<8x128xf32>, vector<8x128xf32>, vector<8x128xf32> -> vector<64x128xf32>
    %c0_41 = arith.constant 0 : index
    %c0_42 = arith.constant 0 : index
    %168 = vector.load %arg7[%c0_41, %c0_42] : memref<128x128xf32, #tpu.memory_space<vmem>>, vector<128x128xf32>
    %cst_43 = arith.constant dense<0.000000e+00> : vector<64x128xf32>
    %169 = tpu.matmul %167, %168, %cst_43 {dimension_numbers = #tpu.dot_dimension_numbers<[1], [0], [0], [1], [0, 0, 1, 1], [], []>} : vector<64x128xf32>, vector<128x128xf32>, vector<64x128xf32> -> vector<64x128xf32>
    %170 = vector.broadcast %5 : vector<1x128xf32> to vector<64x128xf32>
    %171 = arith.addf %169, %170 : vector<64x128xf32>
    %cst_44 = arith.constant 0.000000e+00 : f32
    %172 = vector.broadcast %cst_44 : f32 to vector<64x128xf32>
    %173 = arith.maximumf %171, %172 : vector<64x128xf32>
    %c0_45 = arith.constant 0 : index
    %c0_46 = arith.constant 0 : index
    %174 = vector.load %arg8[%c0_45, %c0_46] : memref<128x2xf32, #tpu.memory_space<vmem>>, vector<128x2xf32>
    %cst_47 = arith.constant dense<0.000000e+00> : vector<64x2xf32>
    %175 = tpu.matmul %173, %174, %cst_47 {dimension_numbers = #tpu.dot_dimension_numbers<[1], [0], [0], [1], [0, 0, 1, 1], [], []>} : vector<64x128xf32>, vector<128x2xf32>, vector<64x2xf32> -> vector<64x2xf32>
    %176 = vector.broadcast %6 : vector<1x2xf32> to vector<64x2xf32>
    %177 = arith.addf %175, %176 : vector<64x2xf32>
    %178 = vector.shape_cast %177 : vector<64x2xf32> to vector<8x8x2xf32>
    %c0_48 = arith.constant 0 : index
    %c0_49 = arith.constant 0 : index
    %c0_50 = arith.constant 0 : index
    %179 = vector.load %arg10[%c0_48, %c0_49, %c0_50] : memref<8x8x2xf32, #tpu.memory_space<vmem>>, vector<8x8x2xf32>
    tpu.vector_store %arg10[%c0_48, %c0_49, %c0_50], %178 {strides = array<i32>} : memref<8x8x2xf32, #tpu.memory_space<vmem>>, vector<8x8x2xf32>,
    return
  }
  func.func @transform_0(%arg0: i32) -> (i32, i32) {
    %c0_i32 = arith.constant 0 : i32
    %c0_i32_0 = arith.constant 0 : i32
    return %arg0, %c0_i32 : i32, i32
  }
  func.func @transform_1(%arg0: i32) -> (i32, i32) {
    %c0_i32 = arith.constant 0 : i32
    %c0_i32_0 = arith.constant 0 : i32
    %c0_i32_1 = arith.constant 0 : i32
    return %c0_i32, %c0_i32_0 : i32, i32
  }
  func.func @transform_2(%arg0: i32) -> (i32, i32) {
    %c0_i32 = arith.constant 0 : i32
    %c0_i32_0 = arith.constant 0 : i32
    %c0_i32_1 = arith.constant 0 : i32
    return %c0_i32, %c0_i32_0 : i32, i32
  }
  func.func @transform_3(%arg0: i32) -> (i32, i32) {
    %c0_i32 = arith.constant 0 : i32
    %c0_i32_0 = arith.constant 0 : i32
    %c0_i32_1 = arith.constant 0 : i32
    return %c0_i32, %c0_i32_0 : i32, i32
  }
  func.func @transform_4(%arg0: i32) -> (i32, i32) {
    %c0_i32 = arith.constant 0 : i32
    %c0_i32_0 = arith.constant 0 : i32
    %c0_i32_1 = arith.constant 0 : i32
    return %c0_i32, %c0_i32_0 : i32, i32
  }
  func.func @transform_5(%arg0: i32) -> (i32, i32) {
    %c0_i32 = arith.constant 0 : i32
    %c0_i32_0 = arith.constant 0 : i32
    %c0_i32_1 = arith.constant 0 : i32
    return %c0_i32, %c0_i32_0 : i32, i32
  }
  func.func @transform_6(%arg0: i32) -> (i32, i32) {
    %c0_i32 = arith.constant 0 : i32
    %c0_i32_0 = arith.constant 0 : i32
    %c0_i32_1 = arith.constant 0 : i32
    return %c0_i32, %c0_i32_0 : i32, i32
  }
  func.func @transform_7(%arg0: i32) -> (i32, i32) {
    %c0_i32 = arith.constant 0 : i32
    %c0_i32_0 = arith.constant 0 : i32
    %c0_i32_1 = arith.constant 0 : i32
    return %c0_i32, %c0_i32_0 : i32, i32
  }
  func.func @transform_8(%arg0: i32) -> (i32, i32) {
    %c0_i32 = arith.constant 0 : i32
    %c0_i32_0 = arith.constant 0 : i32
    %c0_i32_1 = arith.constant 0 : i32
    return %c0_i32, %c0_i32_0 : i32, i32
  }
  func.func @transform_9(%arg0: i32) -> (i32, i32, i32) {
    %c0_i32 = arith.constant 0 : i32
    %c0_i32_0 = arith.constant 0 : i32
    %c0_i32_1 = arith.constant 0 : i32
    return %c0_i32, %arg0, %c0_i32_0 : i32, i32, i32
  }
  func.func @transform_10(%arg0: i32) -> (i32, i32) {
    %c0_i32 = arith.constant 0 : i32
    %c0_i32_0 = arith.constant 0 : i32
    return %arg0, %c0_i32 : i32, i32
  }
}

</mosaic_0001>

<bundles_post_ra>
// kernel: tpu_custom_call.1
= control target key start
LH: loop header
LB: loop body
LE: loop exit
PB: predicated region body
PF: predicated region fallthrough
CT: control target
= control target key end

     0   :  { %s2930_s0 = inlined_call_operand.hbm [shape: f32[16,24], index: 0, kind: input, shape index: {}]   ;;  %s2931_s1 = inlined_call_operand.hbm [shape: f32[2,128], index: 1, kind: input, shape index: {}]   ;;  %s2932_s2 = inlined_call_operand.vmem [shape: f32[128,128], index: 2, kind: input, shape index: {}]   ;;  %s2933_s3 = inlined_call_operand.hbm [shape: f32[128,128], index: 3, kind: input, shape index: {}]   ;;  %s2934_s4 = inlined_call_operand.hbm [shape: f32[128,128], index: 4, kind: input, shape index: {}]   ;;  %s2935_s5 = inlined_call_operand.vmem [shape: f32[1,128], index: 5, kind: input, shape index: {}]   ;;  %s2936_s6 = inlined_call_operand.hbm [shape: f32[128,128], index: 6, kind: input, shape index: {}]   ;;  %s2937_s7 = inlined_call_operand.vmem [shape: f32[128,2], index: 7, kind: input, shape index: {}]   ;;  %s2938_s8 = inlined_call_operand.vmem [shape: f32[8,128], index: 8, kind: input, shape index: {}]   ;;  %s2939_s9 = inlined_call_operand.vmem [shape: f32[8,16,2], index: 9, kind: output, shape index: {0}]   ;;  %s2940_s10 = inlined_call_operand.hbm [shape: f32[16,128], index: 10, kind: output, shape index: {1}]  }
   0x1   :  { %2944 = sst [smem:[#allocation17_spill]] %s2931_s1 }
   0x2   :  { %2945 = sst [smem:[#allocation18_spill]] %s2933_s3 }
   0x3   :  { %2946 = sst [smem:[#allocation19_spill]] %s2934_s4 }
   0x4   :  { %16 = vsyncpa [#allocation3], 0 }
   0x5   :  { %18 = vsyncpa [#allocation3 + $0x1], 0 }
   0x6   :  { %19 = vsyncpa [#allocation6], 0 }
   0x7   :  { %20 = vsyncpa [#allocation9], 0 }
   0x8   :  { %21 = vsyncpa [#allocation4], 0 }
   0x9   :  { %23 = vsyncpa [#allocation4 + $0x1], 0  ;;  %s2439_s13 = smov 0   ;;  %s2441_s14 = smov 0  }
   0xa   :  { %s2443_s15 = smov 0   ;;  %s2445_s16 = smov 0  }
   0xb LB: > { %s2349_s17 = smov [#allocation5]   ;;  %s2460_s19 = sadd.s32 4294967295, %s2347_s16   ;;  %s2347_s16 = sphi %s2445_s16, %s2971_s16   ;;  %s2343_s15 = sphi %s2443_s15, %s2970_s15   ;;  %s2339_s14 = sphi %s2441_s14, %s2969_s14   ;;  %s2335_s13 = sphi %s2439_s13, %s2968_s13  }
   0xc   : > { %s293_s18 = sshll.u32 %s2349_s17, 4  ;;  %p1470_p0 = scmp.ge.s32.totalorder %s2347_s16, 1  ;;  %s294_s18 = int_to_ptr.vmem [resolvable:$true] %s293_s18 }
   0xd   : > { %p2941_p1 = scmp.eq.s32.totalorder %s2460_s19, 0  ;;  %p280_p2 = scmp.lt.s32.totalorder %s2347_s16, 3 }
   0xe   : > { %s2350_s21 = smov [#allocation8]   ;;  %s2351_s24 = smov [#allocation7]  }
   0xf   : > { %p2465_p3 = pnand %p1470_p0, %p280_p2  ;;  %s319_s22 = sshll.u32 %s2350_s21, 4  ;;  %s2478_s22 = int_to_ptr.vmem [resolvable:$true] %s319_s22 }
  0x10   : > { %s306_s25 = sshll.u32 %s2351_s24, 4  ;;  %s2949_s1 = sld [smem:[#allocation17_spill]]  ;;  %s2480_s25 = int_to_ptr.vmem [resolvable:$true] %s306_s25 }
  0x11   : > { %s2947_s20 = scalar_select %p2465_p3, 1, 0 }
  0x12   : > { %p2011_p5 = pneg %p2465_p3 }
  0x14   : > { %p2474_p6 = pnand %p2011_p5, %p2941_p1 }
  0x16   : > { %s2131_s28 = scalar_lea.hbm %s2949_s1, 32  ;;  %p2490_p8 = pneg %p2474_p6 }
  0x17   : > { %p2132_p7 = scmp.ne.s32.totalorder %s2949_s1, %s2131_s28  ;;  %p2138_p11 = scmp.lt.u32.totalorder %s2131_s28, %s2949_s1 }
  0x19   : > { %p2134_p9 = pnand %p2490_p8, %p2132_p7 }
  0x1b   : > { %p2135_p10 = pneg %p2134_p9 }
  0x1d   : > { %p2140_p12 = pnand %p2138_p11, %p2135_p10 }
  0x1f   : > { %2143 = shalt.err (!%p2140_p12)
}
  0x20   : > { %s2144_s21 = scalar_lea.vmem %s294_s18, 32  ;;  %p2152_p5 = scmp.lt.s32.totalorder %s294_s18, %s294_s18 }
  0x21   : > { %p2145_p13 = scmp.ne.s32.totalorder %s294_s18, %s2144_s21  ;;  %p2153_p4 = scmp.lt.s32.totalorder %s2144_s21, %s2144_s21 }
  0x23   : > { %p2147_p0 = pnand %p2145_p13, %p2490_p8  ;;  %p2154_p1 = por %p2153_p4, %p2152_p5 }
  0x25   : > { %p2148_p2 = pneg %p2147_p0 }
  0x27   : > { %p2155_p3 = pnand %p2154_p1, %p2148_p2 }
  0x29   : > { %2158 = shalt.err (!%p2155_p3)
}
  0x2a   : > { %2014 = dma.hbm_to_vmem [thread:$0]  (!%p2474_p6), %s2949_s1, 32, %s294_s18, [#allocation6]  }
  0x2b   : > { %s2951_s4 = sld [smem:[#allocation19_spill]] }
  0x31   : > { %s2159_s29 = scalar_lea.hbm %s2951_s4, 2048 }
  0x32   : > { %p2160_p7 = scmp.ne.s32.totalorder %s2951_s4, %s2159_s29  ;;  %p2166_p1 = scmp.lt.u32.totalorder %s2159_s29, %s2951_s4 }
  0x34   : > { %p2162_p9 = pnand %p2160_p7, %p2490_p8 }
  0x36   : > { %p2163_p4 = pneg %p2162_p9 }
  0x38   : > { %p2168_p3 = pnand %p2166_p1, %p2163_p4 }
  0x3a   : > { %2171 = shalt.err (!%p2168_p3)
}
  0x3b   : > { %s2172_s18 = scalar_lea.vmem %s2478_s22, 2048  ;;  %p2180_p13 = scmp.lt.s32.totalorder %s2478_s22, %s2478_s22 }
  0x3c   : > { %p2173_p10 = scmp.ne.s32.totalorder %s2478_s22, %s2172_s18  ;;  %p2181_p0 = scmp.lt.s32.totalorder %s2172_s18, %s2172_s18 }
  0x3e   : > { %p2175_p11 = pnand %p2173_p10, %p2490_p8  ;;  %p2182_p2 = por %p2181_p0, %p2180_p13 }
  0x40   : > { %p2176_p12 = pneg %p2175_p11 }
  0x42   : > { %p2183_p5 = pnand %p2182_p2, %p2176_p12 }
  0x44   : > { %2186 = shalt.err (!%p2183_p5)
}
  0x45   : > { %s2352_s24 = smov 128   ;;  %s2353_s26 = smov 8  }
  0x46   : > { %2020 = dma.hbm_to_vmem [thread:$0]  (!%p2474_p6), %s2951_s4, 2048, %s2478_s22, [#allocation9], %s2352_s24, %s2352_s24, %s2353_s26  }
  0x47   : > { %s2952_s3 = sld [smem:[#allocation18_spill]] }
  0x4d   : > { %s2187_s12 = scalar_lea.hbm %s2952_s3, 2048 }
  0x4e   : > { %p2188_p7 = scmp.ne.s32.totalorder %s2952_s3, %s2187_s12  ;;  %p2194_p1 = scmp.lt.u32.totalorder %s2187_s12, %s2952_s3 }
  0x50   : > { %p2190_p9 = pnand %p2188_p7, %p2490_p8 }
  0x52   : > { %p2191_p4 = pneg %p2190_p9 }
  0x54   : > { %p2196_p3 = pnand %p2194_p1, %p2191_p4 }
  0x56   : > { %2199 = shalt.err (!%p2196_p3)
}
  0x57   : > { %s2200_s22 = scalar_lea.vmem %s2480_s25, 2048  ;;  %p2208_p13 = scmp.lt.s32.totalorder %s2480_s25, %s2480_s25 }
  0x58   : > { %p2201_p10 = scmp.ne.s32.totalorder %s2480_s25, %s2200_s22  ;;  %p2209_p0 = scmp.lt.s32.totalorder %s2200_s22, %s2200_s22 }
  0x5a   : > { %p2203_p11 = pnand %p2201_p10, %p2490_p8  ;;  %p2210_p2 = por %p2209_p0, %p2208_p13 }
  0x5c   : > { %p2204_p12 = pneg %p2203_p11 }
  0x5e   : > { %p2211_p5 = pnand %p2210_p2, %p2204_p12 }
  0x60   : > { %2214 = shalt.err (!%p2211_p5)
}
  0x61   : > { %2017 = dma.hbm_to_vmem [thread:$0]  (!%p2474_p6), %s2952_s3, 2048, %s2480_s25, [#allocation6], %s2352_s24, %s2352_s24, %s2353_s26  }
  0x62   : > { %s2354_s28 = smov [#allocation10]   ;;  %s2215_s17 = scalar_lea.hbm %s2936_s6, 2048 }
  0x63   : > { %s335_s29 = sshll.u32 %s2354_s28, 4  ;;  %p2216_p7 = scmp.ne.s32.totalorder %s2936_s6, %s2215_s17  ;;  %s336_s29 = int_to_ptr.vmem [resolvable:$true] %s335_s29 }
  0x64   : > { %p2222_p1 = scmp.lt.u32.totalorder %s2215_s17, %s2936_s6 }
  0x65   : > { %p2218_p9 = pnand %p2216_p7, %p2490_p8 }
  0x67   : > { %p2219_p4 = pneg %p2218_p9 }
  0x69   : > { %p2224_p3 = pnand %p2222_p1, %p2219_p4 }
  0x6b   : > { %2227 = shalt.err (!%p2224_p3)
}
  0x6c   : > { %s2228_s25 = scalar_lea.vmem %s336_s29, 2048  ;;  %p2236_p13 = scmp.lt.s32.totalorder %s336_s29, %s336_s29 }
  0x6d   : > { %p2229_p10 = scmp.ne.s32.totalorder %s336_s29, %s2228_s25  ;;  %p2237_p0 = scmp.lt.s32.totalorder %s2228_s25, %s2228_s25 }
  0x6f   : > { %p2231_p11 = pnand %p2229_p10, %p2490_p8  ;;  %p2238_p2 = por %p2237_p0, %p2236_p13 }
  0x71   : > { %p2232_p12 = pneg %p2231_p11 }
  0x73   : > { %p2239_p5 = pnand %p2238_p2, %p2232_p12 }
  0x75   : > { %2242 = shalt.err (!%p2239_p5)
}
  0x76   : > { %2023 = dma.hbm_to_vmem [thread:$0]  (!%p2474_p6), %s2936_s6, 2048, %s336_s29, [#allocation9], %s2352_s24, %s2352_s24, %s2353_s26  }
  0x77   : > { %s1469_s23 = sadd.s32 4294967294, %s2347_s16   ;;  %s2581_s11 = sadd.s32 1, %s2347_s16  }
  0x78   : > { %s33_s27 = ssub.s32 %s2347_s16, %s2581_s11  ;;  %s36_s28 = sadd.s32 1, %s2343_s15 }
  0x79   : > { %p34_p8 = scmp.eq.s32.totalorder %s33_s27, 0  ;;  %p43_p7 = scmp.ne.s32.totalorder %s2343_s15, %s2339_s14 }
  0x7a   : > { %p44_p9 = scmp.eq.s32.totalorder %s2347_s16, 0  ;;  %p49_p4 = scmp.ne.s32.totalorder %s2339_s14, %s2335_s13 }
  0x7b   : > { %s2592_s30 = scalar_select %p34_p8, %s2343_s15, %s36_s28  }
  0x7c   : > { %p2594_p1 = por %p44_p9, %p43_p7  ;;  %p2954_p3 = scmp.eq.s32.totalorder %s2460_s19, 0 }
  0x7d   : > { %p241_p10 = scmp.eq.s32.totalorder %s2460_s19, 1  ;;  %p273_p11 = scmp.eq.s32.totalorder %s1469_s23, 1 }
  0x7e   : > { %p2600_p6 = por %p2954_p3, %p49_p4  ;;  %p2036_p12 = scmp.lt.s32.totalorder %s2347_s16, 2 }
  0x7f   : > { %s355_s26 = sand.u32 1, %s2343_s15   ;;  %p2607_p13 = por %p241_p10, %p43_p7 }
  0x80   : > { %p2611_p0 = por %p273_p11, %p49_p4  ;;  %s1476_s21 = sshll.u32 %s355_s26, 3 }
  0x81   : > { %s2956_s29 = scalar_select %p2607_p13, 1, 0 }
  0x82   : > { %s2957_s17 = scalar_select %p2611_p0, 1, 0 }
  0x83   : > { %s1477_s18 = sshll.u32 %s2347_s16, 7  ;;  %s359_s1 = scalar_lea.vmem [#allocation2], %s1476_s21 }
  0x84   : > { %s2619_s4 = scalar_lea.hbm %s2930_s0, %s1477_s18  ;;  %s366_s23 = sshll.u32 %s359_s1, 4  ;;  %s2621_s23 = int_to_ptr.vmem [resolvable:$true] %s366_s23 }
  0x85   : > { %p2625_p2 = pnand %p2036_p12, %p2594_p1  ;;  %s356_s28 = scalar_lea.sflag [#allocation3], %s355_s26 }
  0x86   : > { %s2243_s3 = scalar_lea.hbm %s2619_s4, 128  ;;  %s2248_s22 = scalar_lea.hbm %s2930_s0, 256 }
  0x87   : > { %p2244_p5 = scmp.ne.s32.totalorder %s2619_s4, %s2243_s3  ;;  %p2245_p8 = pneg %p2625_p2 }
  0x88   : > { %p2249_p4 = scmp.lt.u32.totalorder %s2619_s4, %s2930_s0  ;;  %p2250_p1 = scmp.lt.u32.totalorder %s2248_s22, %s2243_s3 }
  0x89   : > { %p2246_p7 = pnand %p2245_p8, %p2244_p5  ;;  %p2252_p10 = scmp.lt.u32.totalorder %s2243_s3, %s2619_s4 }
  0x8a   : > { %p2251_p3 = por %p2250_p1, %p2249_p4 }
  0x8b   : > { %p2247_p9 = pneg %p2246_p7 }
  0x8c   : > { %p2253_p11 = por %p2252_p10, %p2251_p3 }
  0x8e   : > { %p2254_p12 = pnand %p2253_p11, %p2247_p9 }
  0x90   : > { %2257 = shalt.err (!%p2254_p12)
}
  0x91   : > { %s2258_s26 = scalar_lea.vmem %s2621_s23, 128  ;;  %s2355_s1 = smov [#allocation2]  }
  0x92   : > { %p2259_p5 = scmp.ne.s32.totalorder %s2621_s23, %s2258_s26  ;;  %s2263_s21 = sshll.u32 %s2355_s1, 4  ;;  %s2264_s21 = int_to_ptr.vmem [resolvable:$false] %s2263_s21 }
  0x93   : > { %s2265_s18 = scalar_lea.vmem %s2264_s21, 256  ;;  %p2266_p13 = scmp.lt.s32.totalorder %s2621_s23, %s2264_s21 }
  0x94   : > { %p2261_p7 = pnand %p2259_p5, %p2245_p8  ;;  %p2267_p4 = scmp.lt.s32.totalorder %s2265_s18, %s2258_s26 }
  0x96   : > { %p2262_p0 = pneg %p2261_p7  ;;  %p2268_p1 = por %p2267_p4, %p2266_p13 }
  0x98   : > { %p2269_p3 = pnand %p2268_p1, %p2262_p0 }
  0x9a   : > { %2272 = shalt.err (!%p2269_p3)
}
  0x9b   : > { %2027 = dma.hbm_to_vmem [thread:$0]  (!%p2625_p2), %s2619_s4, 128, %s2621_s23, %s356_s28  }
  0x9c   : > { %p2959_p9 = scmp.ne.s32.totalorder %s2947_s20, 0 }
  0x9d   : > { %s2657_s3 = sand.u32 (!%p2959_p9), 1, %s2339_s14  }
  0x9e   : > { %375 = sbr.rel (%p2959_p9) target bundleno = 1491 (0x5d3), region = 56  ;;  %s1479_s22 = sshll.u32 (!%p2959_p9), %s2657_s3, 3 }
  0x9f   : > { %s378_s12 = scalar_lea.sflag (!%p2959_p9), [#allocation3], %s2657_s3  ;;  %s381_s25 = scalar_lea.vmem (!%p2959_p9), [#allocation2], %s1479_s22 }
  0xa5   : > { %2318 = dma.done.wait (%p2600_p6), %s378_s12, 128  }
  0xa6   : > { %2320 = vsyncadd (%p2600_p6), %s378_s12, 4294967168  ;;  %p2960_p13 = scmp.eq.s32.totalorder %s2460_s19, 0 }
  0xa8   : > { %2322 = dma.done.wait (%p2960_p13), [#allocation6], 2080   ;;  %p2961_p0 = pmov %p2960_p13 }
  0xaa   : > { %2324 = vsyncadd (%p2961_p0), [#allocation6], 4294965216  ;;  %p2962_p2 = pmov %p2961_p0 }
  0xab   : > { %p2963_p8 = pmov %p2961_p0 }
  0xac   : > { %2326 = dma.done.wait (%p2962_p2), [#allocation9], 4096  }
  0xad   : > { %2328 = vsyncadd (%p2963_p8), [#allocation9], 4294963200  ;;  %v2356_v0 = vmov 1   ;;  %v2357_v1 = vmov 0   ;;  %v2675_v2 = vld [vmem:[%s381_s25] sm:$0xff]  ;;  %v572_v6 = vld [vmem:[%s2932_s2 + $0x10] sm:$0xff]  ;;  %v451_v62 = vlaneseq }
  0xae   : > { %2109 = vset.pattern.permute.xlu1 %v2356_v0  ;;  %2107 = vset.pattern.permute.xlu0 %v2357_v1  ;;  %v570_v3 = vld [vmem:[%s2932_s2] sm:$0xff]  ;;  %v571_v4 = vld [vmem:[%s2932_s2 + $0x8] sm:$0xff]  ;;  %v573_v7 = vld [vmem:[%s2932_s2 + $0x18] sm:$0xff]  ;;  %v2358_v11 = vmov 3   ;;  %v2359_v12 = vmov 2   ;;  %v2360_v17 = vmov 4  }
  0xaf   : > { %473 = vperm.xlu1 %2109, %v2675_v2   ;;  %467 = vperm.xlu0 %2107, %v2675_v2   ;;  %v1823_v5 = vpack.c.bf16 %v571_v4, %v570_v3  ;;  %v574_v8 = vld [vmem:[%s2932_s2 + $0x20] sm:$0xff]  ;;  %v575_v9 = vld [vmem:[%s2932_s2 + $0x28] sm:$0xff]  ;;  %v1827_v10 = vpack.c.bf16 %v573_v7, %v572_v6  ;;  %v576_v14 = vld [vmem:[%s2932_s2 + $0x30] sm:$0xff]  ;;  %v2361_v18 = vmov 6   ;;  %v2362_v22 = vmov 5   ;;  %s2760_s4 = scalar_lea.vmem [#allocation12], %s1479_s22 }
  0xb0   : > { %v1831_v13 = vpack.c.bf16 %v575_v9, %v574_v8  ;;  %v577_v15 = vld [vmem:[%s2932_s2 + $0x38] sm:$0xff]  ;;  %v578_v19 = vld [vmem:[%s2932_s2 + $0x40] sm:$0xff]  ;;  %v579_v20 = vld [vmem:[%s2932_s2 + $0x48] sm:$0xff]  ;;  %v2363_v23 = vmov 8   ;;  %v2364_v27 = vmov 7   ;;  %v2365_v28 = vmov 11  }
  0xb1   : > { %1824 = vmatprep.subr.bf16.mxu0 %v1823_v5  ;;  %v1835_v16 = vpack.c.bf16 %v577_v15, %v576_v14  ;;  %v1839_v21 = vpack.c.bf16 %v579_v20, %v578_v19  ;;  %v580_v24 = vld [vmem:[%s2932_s2 + $0x50] sm:$0xff]  ;;  %v581_v25 = vld [vmem:[%s2932_s2 + $0x58] sm:$0xff]  ;;  %v582_v29 = vld [vmem:[%s2932_s2 + $0x60] sm:$0xff]  ;;  %v2366_v32 = vmov 10   ;;  %v2367_v33 = vmov 13   ;;  %s1484_s28 = sshll.u32 %s2657_s3, 6 }
  0xb2   : > { %1826 = vmatpush3.bf16.msra.mxu0 %v1823_v5  ;;  %v1843_v26 = vpack.c.bf16 %v581_v25, %v580_v24  ;;  %v583_v30 = vld [vmem:[%s2932_s2 + $0x68] sm:$0xff]  ;;  %v584_v34 = vld [vmem:[%s2932_s2 + $0x70] sm:$0xff]  ;;  %v585_v35 = vld [vmem:[%s2932_s2 + $0x78] sm:$0xff]  ;;  %v2368_v37 = vmov 9   ;;  %v2369_v38 = vmov 12   ;;  %v2370_v39 = vmov 14  }
  0xb3   : > { %2110 = vset.pattern.permute.xlu1 %v2358_v11  ;;  %2108 = vset.pattern.permute.xlu0 %v2359_v12  ;;  %v1847_v31 = vpack.c.bf16 %v583_v30, %v582_v29  ;;  %v1851_v36 = vpack.c.bf16 %v585_v35, %v584_v34  ;;  %v2371_v40 = vmov 15   ;;  %v703_v41 = vld [vmem:[#allocation7] sm:$0xff]  ;;  %v704_v42 = vld [vmem:[#allocation7 + $0x8] sm:$0xff]  ;;  %v705_v43 = vld [vmem:[#allocation7 + $0x10] sm:$0xff]  ;;  %v452_v63 = vshrl.u32 %v451_v62, 7  ;;  %s2860_s1 = scalar_lea.vmem [#allocation11], %s1484_s28 }
  0xb4   : > { %486 = vperm.xlu1 %2110, %v2675_v2   ;;  %480 = vperm.xlu0 %2108, %v2675_v2   ;;  %v1855_v44 = vpack.c.bf16 %v704_v42, %v703_v41  ;;  %v706_v45 = vld [vmem:[#allocation7 + $0x18] sm:$0xff]  ;;  %v707_v47 = vld [vmem:[#allocation7 + $0x20] sm:$0xff]  ;;  %v708_v48 = vld [vmem:[#allocation7 + $0x28] sm:$0xff]  ;;  %vm2373_vm0 = vmmov 0   ;;  %vm1241_vm1 = vcmask 15360   ;;  %s1255_s21 = scalar_lea.sflag [#allocation4], %s2657_s3 }
  0xb5   : > { %1828 = vmatprep.subr.bf16.mxu0 %v1827_v10  ;;  %v1859_v46 = vpack.c.bf16 %v706_v45, %v705_v43  ;;  %v1863_v49 = vpack.c.bf16 %v708_v48, %v707_v47  ;;  %v709_v50 = vld [vmem:[#allocation7 + $0x30] sm:$0xff]  ;;  %v710_v51 = vld [vmem:[#allocation7 + $0x38] sm:$0xff]  ;;  %v711_v53 = vld [vmem:[#allocation7 + $0x40] sm:$0xff]  ;;  %v453_v0 = vsub.s32 0, %v452_v63  ;;  %v457_v3 = vsub.s32 1, %v452_v63  ;;  %p2964_p6 = scmp.ne.s32.totalorder %s2956_s29, 0 }
  0xb6   : > { %1830 = vmatpush3.bf16.msra.mxu0 %v1827_v10  ;;  %1856 = vmatprep.subr.bf16.mxu1 %v1855_v44  ;;  %v1867_v52 = vpack.c.bf16 %v710_v51, %v709_v50  ;;  %v712_v54 = vld [vmem:[#allocation7 + $0x48] sm:$0xff]  ;;  %v713_v56 = vld [vmem:[#allocation7 + $0x50] sm:$0xff]  ;;  %v714_v57 = vld [vmem:[#allocation7 + $0x58] sm:$0xff]  ;;  %s1495_s18 = sshll.u32 (%p2964_p6), %s2460_s19, 3 }
  0xb7   : > { %1832 = vmatprep.subr.bf16.mxu0 %v1831_v13  ;;  %1858 = vmatpush3.bf16.msra.mxu1 %v1855_v44  ;;  %v1871_v55 = vpack.c.bf16 %v712_v54, %v711_v53  ;;  %v1875_v58 = vpack.c.bf16 %v714_v57, %v713_v56  ;;  %v715_v59 = vld [vmem:[#allocation7 + $0x60] sm:$0xff]  ;;  %v716_v60 = vld [vmem:[#allocation7 + $0x68] sm:$0xff]  ;;  %v445_v1 = vld [vmem:[#allocation5] sm:$0x3]  ;;  %s1263_s20 = scalar_lea.vmem (%p2964_p6), %s2939_s9, %s1495_s18 }
  0xb8   : > { %2111 = vset.pattern.permute.xlu1 %v2360_v17  ;;  %2112 = vset.pattern.permute.xlu0 %v2361_v18  ;;  %v1879_v61 = vpack.c.bf16 %v716_v60, %v715_v59  ;;  %v454_v4 = vrot.slane %v445_v1, %v453_v0  ;;  %v458_v5 = vrot.slane %v445_v1, %v457_v3  ;;  %v1486_v8 = vld [vmem:[%s2938_s8] ss:$0 sm:$0xff]  ;;  %v717_v63 = vld [vmem:[#allocation7 + $0x70] sm:$0xff]  ;;  %v718_v0 = vld [vmem:[#allocation7 + $0x78] sm:$0xff] }
  0xb9   : > { %493 = vperm.xlu1 %2111, %v2675_v2   ;;  %506 = vperm.xlu0 %2112, %v2675_v2   ;;  %v1883_v1 = vpack.c.bf16 %v718_v0, %v717_v63  ;;  %v1488_v3 = vld [vmem:[%s2938_s8 + $0x1] ss:$0 sm:$0xff]  ;;  %v2377_v0 = vmov 18  }
  0xba   : > { %1834 = vmatpush3.bf16.msra.mxu0 %v1831_v13  ;;  %1860 = vmatprep.subr.bf16.mxu1 %v1859_v46 }
  0xbb   : > { %1836 = vmatprep.subr.bf16.mxu0 %v1835_v16  ;;  %1862 = vmatpush3.bf16.msra.mxu1 %v1859_v46 }
  0xbc   : > { %1864 = vmatprep.subr.bf16.mxu1 %v1863_v49 }
  0xbd   : > { %2113 = vset.pattern.permute.xlu1 %v2362_v22  ;;  %2115 = vset.pattern.permute.xlu0 %v2363_v23 }
  0xbe   : > { %499 = vperm.xlu1 %2113, %v2675_v2   ;;  %519 = vperm.xlu0 %2115, %v2675_v2  }
  0xbf   : > { %1838 = vmatpush3.bf16.msra.mxu0 %v1835_v16  ;;  %1866 = vmatpush3.bf16.msra.mxu1 %v1863_v49 }
  0xc0   : > { %1840 = vmatprep.subr.bf16.mxu0 %v1839_v21  ;;  %1868 = vmatprep.subr.bf16.mxu1 %v1867_v52 }
  0xc2   : > { %2114 = vset.pattern.permute.xlu1 %v2364_v27  ;;  %2118 = vset.pattern.permute.xlu0 %v2365_v28 }
  0xc3   : > { %512 = vperm.xlu1 %2114, %v2675_v2   ;;  %538 = vperm.xlu0 %2118, %v2675_v2  }
  0xc4   : > { %1842 = vmatpush3.bf16.msra.mxu0 %v1839_v21  ;;  %1870 = vmatpush3.bf16.msra.mxu1 %v1867_v52 }
  0xc5   : > { %1844 = vmatprep.subr.bf16.mxu0 %v1843_v26  ;;  %1872 = vmatprep.subr.bf16.mxu1 %v1871_v55 }
  0xc7   : > { %2116 = vset.pattern.permute.xlu1 %v2366_v32  ;;  %2121 = vset.pattern.permute.xlu0 %v2367_v33 }
  0xc8   : > { %532 = vperm.xlu1 %2116, %v2675_v2   ;;  %551 = vperm.xlu0 %2121, %v2675_v2  }
  0xc9   : > { %1846 = vmatpush3.bf16.msra.mxu0 %v1843_v26  ;;  %1874 = vmatpush3.bf16.msra.mxu1 %v1871_v55 }
  0xca   : > { %1848 = vmatprep.subr.bf16.mxu0 %v1847_v31  ;;  %1876 = vmatprep.subr.bf16.mxu1 %v1875_v58 }
  0xcc   : > { %2117 = vset.pattern.permute.xlu1 %v2368_v37 }
  0xcd   : > { %525 = vperm.xlu1 %2117, %v2675_v2   ;;  %1850 = vmatpush3.bf16.msra.mxu0 %v1847_v31 }
  0xce   : > { %1852 = vmatprep.subr.bf16.mxu0 %v1851_v36  ;;  %1878 = vmatpush3.bf16.msra.mxu1 %v1875_v58 }
  0xcf   : > { %1880 = vmatprep.subr.bf16.mxu1 %v1879_v61 }
  0xd1   : > { %2119 = vset.pattern.permute.xlu1 %v2369_v38  ;;  %1854 = vmatpush3.bf16.msra.mxu0 %v1851_v36 }
  0xd2   : > { %545 = vperm.xlu1 %2119, %v2675_v2   ;;  %1882 = vmatpush3.bf16.msra.mxu1 %v1879_v61 }
  0xd3   : > { %1884 = vmatprep.subr.bf16.mxu1 %v1883_v1 }
  0xd6   : > { %2120 = vset.pattern.permute.xlu1 %v2370_v39  ;;  %1886 = vmatpush3.bf16.msra.mxu1 %v1883_v1  ;;  %v2378_v1 = vmov 20  }
  0xd7   : > { %558 = vperm.xlu1 %2120, %v2675_v2  }
  0xdb   : > { %2122 = vset.pattern.permute.xlu1 %v2371_v40 }
  0xdc   : > { %564 = vperm.xlu1 %2122, %v2675_v2  }
 0x12e   : > { %v474_v6 = vpop.permute.xlu1 %473  ;;  %v468_v7 = vpop.permute.xlu0 %467 }
 0x12f   : > { %v470_v9 = vmul.f32 %v468_v7, %v454_v4  ;;  %v476_v10 = vmul.f32 %v474_v6, %v458_v5 }
 0x131   : > { %v471_v11 = vadd.f32 %v1486_v8, %v470_v9 }
 0x133   : > { %v487_v12 = vpop.permute.xlu1 %486  ;;  %v481_v13 = vpop.permute.xlu0 %480  ;;  %v477_v14 = vadd.f32 %v476_v10, %v471_v11 }
 0x134   : > { %v483_v15 = vmul.f32 %v481_v13, %v454_v4  ;;  %v489_v17 = vmul.f32 %v487_v12, %v458_v5 }
 0x135   : > { %v478_v16 = vmax.f32 %v477_v14, 0.0 }
 0x136   : > { %v484_v18 = vadd.f32 %v1486_v8, %v483_v15 }
 0x137   : > { %1644 = vmatprep.mubr.f32.mxu0 %v478_v16 }
 0x138   : > { %v494_v19 = vpop.permute.xlu1 %493  ;;  %v490_v20 = vadd.f32 %v489_v17, %v484_v18  ;;  %v507_v23 = vpop.permute.xlu0 %506 }
 0x139   : > { %v496_v21 = vmul.f32 %v494_v19, %v454_v4  ;;  %v509_v25 = vmul.f32 %v507_v23, %v454_v4 }
 0x13a   : > { %v491_v22 = vmax.f32 %v490_v20, 0.0 }
 0x13b   : > { %v497_v26 = vadd.f32 %v1486_v8, %v496_v21  ;;  %v510_v29 = vadd.f32 %v1486_v8, %v509_v25 }
 0x13c   : > { %1645 = vmatmul.mubr.f32.vlgmr.msra.gmra.mrb[0].mxu0 %v491_v22 }
 0x13d   : > { %v500_v24 = vpop.permute.xlu1 %499  ;;  %v520_v30 = vpop.permute.xlu0 %519 }
 0x13e   : > { %v502_v27 = vmul.f32 %v500_v24, %v458_v5  ;;  %v522_v36 = vmul.f32 %v520_v30, %v454_v4 }
 0x140   : > { %v503_v28 = vadd.f32 %v502_v27, %v497_v26  ;;  %v523_v42 = vadd.f32 %v1486_v8, %v522_v36  ;;  %v842_v36 = vld [vmem:[#allocation8 + $0x28] sm:$0xff] }
 0x142   : > { %v504_v31 = vmax.f32 %v503_v28, 0.0  ;;  %v513_v32 = vpop.permute.xlu1 %512  ;;  %v539_v38 = vpop.permute.xlu0 %538  ;;  %v837_v28 = vld [vmem:[#allocation8] sm:$0xff] }
 0x143   : > { %v515_v33 = vmul.f32 %v513_v32, %v458_v5  ;;  %v541_v41 = vmul.f32 %v539_v38, %v458_v5  ;;  %v839_v32 = vld [vmem:[#allocation8 + $0x10] sm:$0xff] }
 0x144   : > { %1647 = vmatprep.mubr.f32.mxu0 %v504_v31  ;;  %v2372_v31 = vmov 0.0|0.0   ;;  %v843_v38 = vld [vmem:[#allocation8 + $0x30] sm:$0xff] }
 0x145   : > { %v516_v34 = vadd.f32 %v515_v33, %v510_v29  ;;  %v838_v29 = vld [vmem:[#allocation8 + $0x8] sm:$0xff]  ;;  %1887 = vmatprep.subr.bf16.mxu0 %v2372_v31  ;;  %v840_v33 = vld [vmem:[#allocation8 + $0x18] sm:$0xff] }
 0x146   : > { %v1888_v30 = vpack.c.bf16 %v838_v29, %v837_v28 }
 0x147   : > { %v517_v35 = vmax.f32 %v516_v34, 0.0  ;;  %v533_v37 = vpop.permute.xlu1 %532  ;;  %v552_v47 = vpop.permute.xlu0 %551  ;;  %v1891_v34 = vpack.c.bf16 %v840_v33, %v839_v32 }
 0x148   : > { %v535_v39 = vmul.f32 %v533_v37, %v454_v4  ;;  %v554_v52 = vmul.f32 %v552_v47, %v458_v5  ;;  %1889 = vmatpush3.bf16.msra.mxu0 %v1888_v30  ;;  %v849_v47 = vld [vmem:[#allocation8 + $0x60] sm:$0xff] }
 0x149   : > { %1648 = vmatmul.mubr.f32.gmra.mrb[2].mxu0 %v517_v35  ;;  %1890 = vmatprep.subr.bf16.mxu0 %v2372_v31  ;;  %v841_v35 = vld [vmem:[#allocation8 + $0x20] sm:$0xff] }
 0x14a   : > { %v536_v40 = vadd.f32 %v1486_v8, %v535_v39  ;;  %v1894_v37 = vpack.c.bf16 %v842_v36, %v841_v35  ;;  %v844_v39 = vld [vmem:[#allocation8 + $0x38] sm:$0xff] }
 0x14c   : > { %v526_v43 = vpop.permute.xlu1 %525  ;;  %v542_v45 = vadd.f32 %v541_v41, %v536_v40  ;;  %1892 = vmatpush3.bf16.msra.mxu0 %v1891_v34  ;;  %v1897_v40 = vpack.c.bf16 %v844_v39, %v843_v38  ;;  %v845_v41 = vld [vmem:[#allocation8 + $0x40] sm:$0xff] }
 0x14d   : > { %v528_v44 = vmul.f32 %v526_v43, %v458_v5  ;;  %1893 = vmatprep.subr.bf16.mxu0 %v2372_v31 }
 0x14e   : > { %v543_v50 = vmax.f32 %v542_v45, 0.0  ;;  %v848_v45 = vld [vmem:[#allocation8 + $0x58] sm:$0xff] }
 0x14f   : > { %v529_v46 = vadd.f32 %v528_v44, %v523_v42  ;;  %v846_v42 = vld [vmem:[#allocation8 + $0x48] sm:$0xff]  ;;  %v847_v44 = vld [vmem:[#allocation8 + $0x50] sm:$0xff] }
 0x150   : > { %1895 = vmatpush3.bf16.msra.mxu0 %v1894_v37  ;;  %v1900_v43 = vpack.c.bf16 %v846_v42, %v845_v41  ;;  %v995_v41 = vld [vmem:[#allocation10 + $0x60] sm:$0xff]  ;;  %v996_v42 = vld [vmem:[#allocation10 + $0x68] sm:$0xff] }
 0x151   : > { %v530_v48 = vmax.f32 %v529_v46, 0.0  ;;  %v546_v49 = vpop.permute.xlu1 %545  ;;  %1896 = vmatprep.subr.bf16.mxu0 %v2372_v31  ;;  %v1903_v46 = vpack.c.bf16 %v848_v45, %v847_v44  ;;  %v997_v44 = vld [vmem:[#allocation10 + $0x70] sm:$0xff]  ;;  %v998_v45 = vld [vmem:[#allocation10 + $0x78] sm:$0xff] }
 0x152   : > { %v548_v51 = vmul.f32 %v546_v49, %v454_v4 }
 0x153   : > { %1650 = vmatprep.mubr.f32.mxu0 %v530_v48  ;;  %v850_v48 = vld [vmem:[#allocation8 + $0x68] sm:$0xff] }
 0x154   : > { %v549_v53 = vadd.f32 %v1486_v8, %v548_v51  ;;  %1651 = vmatmul.mubr.f32.gmra.mrb[4].mxu0 %v543_v50  ;;  %v1906_v49 = vpack.c.bf16 %v850_v48, %v849_v47  ;;  %v851_v50 = vld [vmem:[#allocation8 + $0x70] sm:$0xff]  ;;  %v852_v51 = vld [vmem:[#allocation8 + $0x78] sm:$0xff] }
 0x155   : > { %1898 = vmatpush3.bf16.msra.mxu0 %v1897_v40  ;;  %v1116_v47 = vld [vmem:[%s2937_s7] sm:$0xff]  ;;  %v1117_v48 = vld [vmem:[%s2937_s7 + $0x8] sm:$0xff] }
 0x156   : > { %v555_v54 = vadd.f32 %v554_v52, %v549_v53  ;;  %v559_v55 = vpop.permute.xlu1 %558  ;;  %1899 = vmatprep.subr.bf16.mxu0 %v2372_v31  ;;  %v1909_v52 = vpack.c.bf16 %v852_v51, %v851_v50  ;;  %v2374_v53 = vmov 0.0   ;;  %v2772_v50 = vpack.c.bf16 %v1117_v48, %v1116_v47  ;;  %v1119_v51 = vld [vmem:[%s2937_s7 + $0x18] sm:$0xff] }
 0x157   : > { %v561_v57 = vmul.f32 %v559_v55, %v454_v4  ;;  %v984_v55 = vld [vmem:[#allocation10 + $0x8] sm:$0xff] }
 0x158   : > { %v556_v56 = vmax.f32 %v555_v54, 0.0  ;;  %v983_v54 = vld [vmem:[#allocation10] sm:$0xff] }
 0x159   : > { %v562_v59 = vadd.f32 %v1486_v8, %v561_v57  ;;  %1901 = vmatpush3.bf16.msra.mxu0 %v1900_v43  ;;  %v2376_v57 = vmov 17   ;;  %v1935_v43 = vpack.c.bf16 %v996_v42, %v995_v41  ;;  %v1130_v41 = vld [vmem:[%s2937_s7 + $0x70] sm:$0xff]  ;;  %v1131_v42 = vld [vmem:[%s2937_s7 + $0x78] sm:$0xff] }
 0x15a   : > { %1653 = vmatprep.mubr.f32.mxu0 %v556_v56  ;;  %1902 = vmatprep.subr.bf16.mxu0 %v2372_v31  ;;  %v2375_v56 = vmov 16  }
 0x15b   : > { %v565_v58 = vpop.permute.xlu1 %564  ;;  %2123 = vset.pattern.permute.xlu1 %v2375_v56  ;;  %2124 = vset.pattern.permute.xlu0 %v2376_v57  ;;  %v1122_v56 = vld [vmem:[%s2937_s7 + $0x30] sm:$0xff]  ;;  %v1123_v57 = vld [vmem:[%s2937_s7 + $0x38] sm:$0xff] }
 0x15c   : > { %v567_v60 = vmul.f32 %v565_v58, %v458_v5  ;;  %v985_v58 = vld [vmem:[#allocation10 + $0x10] sm:$0xff]  ;;  %928 = vperm.xlu1 %2123, %v2675_v2   ;;  %935 = vperm.xlu0 %2124, %v2675_v2  }
 0x15d   : > { %1904 = vmatpush3.bf16.msra.mxu0 %v1903_v46  ;;  %v1939_v46 = vpack.c.bf16 %v998_v45, %v997_v44  ;;  %v1491_v44 = vld [vmem:[%s2938_s8 + $0x4] ss:$0 sm:$0xff] }
 0x15e   : > { %v568_v61 = vadd.f32 %v567_v60, %v562_v59  ;;  %1905 = vmatprep.subr.bf16.mxu0 %v2372_v31  ;;  %v986_v59 = vld [vmem:[#allocation10 + $0x18] sm:$0xff]  ;;  %v1911_v60 = vpack.c.bf16 %v984_v55, %v983_v54 }
 0x15f   : > { %v1915_v63 = vpack.c.bf16 %v986_v59, %v985_v58  ;;  %v1121_v54 = vld [vmem:[%s2937_s7 + $0x28] sm:$0xff]  ;;  %v2799_v58 = vpack.c.bf16 %v1123_v57, %v1122_v56  ;;  %v1124_v59 = vld [vmem:[%s2937_s7 + $0x40] sm:$0xff] }
 0x160   : > { %v569_v62 = vmax.f32 %v568_v61, 0.0  ;;  %v987_v61 = vld [vmem:[#allocation10 + $0x20] sm:$0xff]  ;;  %1912 = vmatprep.subr.bf16.mxu1 %v1911_v60  ;;  %2125 = vset.pattern.permute.xlu1 %v2377_v0 }
 0x161   : > { %1907 = vmatpush3.bf16.msra.mxu0 %v1906_v49  ;;  %2127 = vset.pattern.permute.xlu0 %v2378_v1  ;;  %v1118_v49 = vld [vmem:[%s2937_s7 + $0x10] sm:$0xff]  ;;  %v1128_v1 = vld [vmem:[%s2937_s7 + $0x60] sm:$0xff] }
 0x162   : > { %1654 = vmatmul.mubr.f32.gmra.mrb[6].mxu0 %v569_v62  ;;  %1908 = vmatprep.subr.bf16.mxu0 %v2372_v31  ;;  %v988_v62 = vld [vmem:[#allocation10 + $0x28] sm:$0xff] }
 0x163   : > { %1732 = vmatprep.mubr.msk.f32.mxu0 %vm2373_vm0, %v2374_v53  ;;  %942 = vperm.xlu1 %2125, %v2675_v2   ;;  %v1120_v53 = vld [vmem:[%s2937_s7 + $0x20] sm:$0xff] }
 0x164   : > { %956 = vperm.xlu0 %2127, %v2675_v2   ;;  %v2789_v55 = vpack.c.bf16 %v1121_v54, %v1120_v53 }
 0x165   : > { %1910 = vmatpush3.bf16.msra.mxu0 %v1909_v52  ;;  %v2777_v52 = vpack.c.bf16 %v1119_v51, %v1118_v49 }
 0x166   : > { %1944 = vmatprep.subr.bf16.mxu0 %v2772_v50 }
 0x20f   : > { %v1646_v6 = vpop.f32.mrb[0].mxu0 }
 0x210   : > { %v662_v7 = vadd.f32 %v1646_v6, %v1488_v3  ;;  %v656_v9 = vpop.f32.mrb[1].mxu0  ;;  %v989_v6 = vld [vmem:[#allocation10 + $0x30] sm:$0xff] }
 0x211   : > { %v657_v4 = vadd.f32 %v1488_v3, %v656_v9 }
 0x212   : > { %v696_v11 = vmax.f32 %v662_v7, 0.0  ;;  %v990_v7 = vld [vmem:[#allocation10 + $0x38] sm:$0xff] }
 0x213   : > { %v695_v10 = vmax.f32 %v657_v4, 0.0  ;;  %v1923_v9 = vpack.c.bf16 %v990_v7, %v989_v6  ;;  %v2379_v4 = vmov 19   ;;  %v929_v7 = vpop.permute.xlu1 %928 }
 0x214   : > { %2126 = vset.pattern.permute.xlu1 %v2379_v4 }
 0x215   : > { %1688 = vmatprep.mubr.f32.mxu1 %v695_v10  ;;  %v2380_v10 = vmov 23   ;;  %949 = vperm.xlu1 %2126, %v2675_v2  }
 0x216   : > { %1689 = vmatmul.mubr.f32.vlgmr.msra.gmra.mrb[0].mxu1 %v696_v11  ;;  %2130 = vset.pattern.permute.xlu0 %v2380_v10  ;;  %v991_v11 = vld [vmem:[#allocation10 + $0x40] sm:$0xff]  ;;  %v936_v10 = vpop.permute.xlu0 %935 }
 0x217   : > { %1914 = vmatpush3.bf16.msra.mxu1 %v1911_v60  ;;  %977 = vperm.xlu0 %2130, %v2675_v2   ;;  %v1125_v60 = vld [vmem:[%s2937_s7 + $0x48] sm:$0xff] }
 0x218   : > { %1916 = vmatprep.subr.bf16.mxu1 %v1915_v63 }
 0x21b   : > { %1918 = vmatpush3.bf16.msra.mxu1 %v1915_v63  ;;  %v1127_v63 = vld [vmem:[%s2937_s7 + $0x58] sm:$0xff] }
 0x21c   : > { %v1649_v5 = vpop.f32.mrb[2].mxu0 }
 0x21d   : > { %v672_v8 = vadd.f32 %v1649_v5, %v1488_v3  ;;  %v666_v12 = vpop.f32.mrb[3].mxu0  ;;  %v992_v5 = vld [vmem:[#allocation10 + $0x48] sm:$0xff] }
 0x21e   : > { %v667_v13 = vadd.f32 %v1488_v3, %v666_v12  ;;  %v2381_v12 = vmov 21  }
 0x21f   : > { %v698_v15 = vmax.f32 %v672_v8, 0.0  ;;  %v1927_v8 = vpack.c.bf16 %v992_v5, %v991_v11  ;;  %2128 = vset.pattern.permute.xlu1 %v2381_v12  ;;  %v1487_v11 = vld [vmem:[%s2935_s5] ss:$0 sm:$0xff] }
 0x220   : > { %v697_v14 = vmax.f32 %v667_v13, 0.0  ;;  %963 = vperm.xlu1 %2128, %v2675_v2   ;;  %v993_v13 = vld [vmem:[#allocation10 + $0x50] sm:$0xff]  ;;  %v938_v12 = vmul.f32 %v1487_v11, %v936_v10 }
 0x222   : > { %1691 = vmatprep.mubr.f32.mxu1 %v697_v14  ;;  %v994_v14 = vld [vmem:[#allocation10 + $0x58] sm:$0xff] }
 0x223   : > { %1692 = vmatmul.mubr.f32.gmra.mrb[2].mxu1 %v698_v15  ;;  %v1931_v15 = vpack.c.bf16 %v994_v14, %v993_v13  ;;  %v931_v14 = vmul.f32 %v1487_v11, %v929_v7 }
 0x227   : > { %v1652_v16 = vpop.f32.mrb[4].mxu0 }
 0x228   : > { %v682_v17 = vadd.f32 %v1652_v16, %v1488_v3  ;;  %v676_v18 = vpop.f32.mrb[5].mxu0  ;;  %v2382_v16 = vmov 22  }
 0x229   : > { %v677_v19 = vadd.f32 %v1488_v3, %v676_v18  ;;  %2129 = vset.pattern.permute.xlu1 %v2382_v16  ;;  %v957_v16 = vpop.permute.xlu0 %956 }
 0x22a   : > { %v700_v21 = vmax.f32 %v682_v17, 0.0  ;;  %970 = vperm.xlu1 %2129, %v2675_v2   ;;  %v1489_v17 = vld [vmem:[%s2938_s8 + $0x2] ss:$0 sm:$0xff] }
 0x22b   : > { %v699_v20 = vmax.f32 %v677_v19, 0.0 }
 0x22d   : > { %1694 = vmatprep.mubr.f32.mxu1 %v699_v20 }
 0x22e   : > { %1695 = vmatmul.mubr.f32.gmra.mrb[4].mxu1 %v700_v21 }
 0x235   : > { %v1655_v22 = vpop.f32.mrb[6].mxu0 }
 0x236   : > { %v692_v23 = vadd.f32 %v1655_v22, %v1488_v3  ;;  %v686_v24 = vpop.f32.mrb[7].mxu0 }
 0x237   : > { %v687_v25 = vadd.f32 %v1488_v3, %v686_v24  ;;  %v1919_v3 = vpack.c.bf16 %v988_v62, %v987_v61  ;;  %v2809_v61 = vpack.c.bf16 %v1125_v60, %v1124_v59  ;;  %v1126_v62 = vld [vmem:[%s2937_s7 + $0x50] sm:$0xff] }
 0x238   : > { %v702_v27 = vmax.f32 %v692_v23, 0.0  ;;  %v2819_v0 = vpack.c.bf16 %v1127_v63, %v1126_v62 }
 0x239   : > { %v701_v26 = vmax.f32 %v687_v25, 0.0  ;;  %1920 = vmatprep.subr.bf16.mxu1 %v1919_v3 }
 0x23a   : > { %1922 = vmatpush3.bf16.msra.mxu1 %v1919_v3  ;;  %v1129_v3 = vld [vmem:[%s2937_s7 + $0x68] sm:$0xff] }
 0x23b   : > { %1697 = vmatprep.mubr.f32.mxu1 %v701_v26  ;;  %1924 = vmatprep.subr.bf16.mxu1 %v1923_v9  ;;  %v1967_v6 = vpack.c.bf16 %v1129_v3, %v1128_v1 }
 0x23c   : > { %1698 = vmatmul.mubr.f32.gmra.mrb[6].mxu1 %v702_v27 }
 0x23e   : > { %1926 = vmatpush3.bf16.msra.mxu1 %v1923_v9  ;;  %v943_v9 = vpop.permute.xlu1 %942 }
 0x23f   : > { %1928 = vmatprep.subr.bf16.mxu1 %v1927_v8 }
 0x242   : > { %1930 = vmatpush3.bf16.msra.mxu1 %v1927_v8  ;;  %v1490_v8 = vld [vmem:[%s2938_s8 + $0x3] ss:$0 sm:$0xff] }
 0x243   : > { %1932 = vmatprep.subr.bf16.mxu1 %v1931_v15 }
 0x246   : > { %1934 = vmatpush3.bf16.msra.mxu1 %v1931_v15  ;;  %v945_v15 = vmul.f32 %v1487_v11, %v943_v9  ;;  %v1492_v9 = vld [vmem:[%s2938_s8 + $0x5] ss:$0 sm:$0xff] }
 0x247   : > { %1936 = vmatprep.subr.bf16.mxu1 %v1935_v43 }
 0x24a   : > { %1938 = vmatpush3.bf16.msra.mxu1 %v1935_v43  ;;  %v1971_v43 = vpack.c.bf16 %v1131_v42, %v1130_v41 }
 0x24b   : > { %1940 = vmatprep.subr.bf16.mxu1 %v1939_v46 }
 0x24e   : > { %1942 = vmatpush3.bf16.msra.mxu1 %v1939_v46 }
 0x24f   : > { %1975 = vmatprep.subr.bf16.mxu1 %v2772_v50 }
 0x294   : > { %v950_v4 = vpop.permute.xlu1 %949 }
 0x29f   : > { %v964_v5 = vpop.permute.xlu1 %963 }
 0x2e9   : > { %v1690_v18 = vpop.f32.mrb[0].mxu1 }
 0x2ea   : > { %v795_v19 = vadd.f32 %v1690_v18, %v1489_v17  ;;  %v789_v20 = vpop.f32.mrb[1].mxu1 }
 0x2eb   : > { %v790_v21 = vadd.f32 %v1489_v17, %v789_v20  ;;  %v959_v20 = vmul.f32 %v1487_v11, %v957_v16 }
 0x2ed   : > { %v828_v22 = vadd.f32 %v795_v19, %v790_v21  ;;  %v952_v19 = vmul.f32 %v1487_v11, %v950_v4 }
 0x2f6   : > { %v1693_v23 = vpop.f32.mrb[2].mxu1 }
 0x2f7   : > { %v799_v24 = vpop.f32.mrb[3].mxu1  ;;  %v805_v26 = vadd.f32 %v1693_v23, %v1489_v17 }
 0x2f8   : > { %v800_v25 = vadd.f32 %v1489_v17, %v799_v24  ;;  %v971_v24 = vpop.permute.xlu1 %970 }
 0x2fa   : > { %v829_v27 = vadd.f32 %v828_v22, %v800_v25 }
 0x2fc   : > { %v830_v28 = vadd.f32 %v829_v27, %v805_v26  ;;  %v966_v27 = vmul.f32 %v1487_v11, %v964_v5 }
 0x301   : > { %v1696_v29 = vpop.f32.mrb[4].mxu1 }
 0x302   : > { %v809_v2 = vpop.f32.mrb[5].mxu1  ;;  %v815_v31 = vadd.f32 %v1696_v29, %v1489_v17  ;;  %v973_v29 = vmul.f32 %v1487_v11, %v971_v24 }
 0x303   : > { %v810_v30 = vadd.f32 %v1489_v17, %v809_v2  ;;  %v978_v2 = vpop.permute.xlu0 %977 }
 0x305   : > { %v831_v32 = vadd.f32 %v830_v28, %v810_v30 }
 0x307   : > { %v832_v33 = vadd.f32 %v831_v32, %v815_v31  ;;  %v980_v32 = vmul.f32 %v1487_v11, %v978_v2 }
 0x30f   : > { %v1699_v34 = vpop.f32.mrb[6].mxu1 }
 0x310   : > { %v819_v35 = vpop.f32.mrb[7].mxu1  ;;  %v825_v37 = vadd.f32 %v1699_v34, %v1489_v17 }
 0x311   : > { %v820_v36 = vadd.f32 %v1489_v17, %v819_v35 }
 0x313   : > { %v833_v38 = vadd.f32 %v832_v33, %v820_v36 }
 0x315   : > { %v834_v39 = vadd.f32 %v833_v38, %v825_v37 }
 0x317   : > { %v835_v40 = vmul.f32 0.125, %v834_v39 }
 0x319   : > { %836 = vst [vmem:[%s2760_s4] sm:$0xff] %v835_v40  ;;  %1733 = vmatmul.mubr.f32.vlgmr.msra.gmra.mrb[8].mxu0 %v835_v40 }
 0x31a   : > { %1946 = vmatpush3.bf16.msra.mxu0 %v2772_v50 }
 0x31b   : > { %1948 = vmatprep.subr.bf16.mxu0 %v2777_v52 }
 0x31e   : > { %1950 = vmatpush3.bf16.msra.mxu0 %v2777_v52 }
 0x31f   : > { %1952 = vmatprep.subr.bf16.mxu0 %v2789_v55 }
 0x322   : > { %1954 = vmatpush3.bf16.msra.mxu0 %v2789_v55 }
 0x323   : > { %1956 = vmatprep.subr.bf16.mxu0 %v2799_v58 }
 0x326   : > { %1958 = vmatpush3.bf16.msra.mxu0 %v2799_v58 }
 0x327   : > { %1960 = vmatprep.subr.bf16.mxu0 %v2809_v61 }
 0x32a   : > { %1962 = vmatpush3.bf16.msra.mxu0 %v2809_v61 }
 0x32b   : > { %1964 = vmatprep.subr.bf16.mxu0 %v2819_v0 }
 0x32e   : > { %1966 = vmatpush3.bf16.msra.mxu0 %v2819_v0 }
 0x32f   : > { %1968 = vmatprep.subr.bf16.mxu0 %v1967_v6 }
 0x332   : > { %1970 = vmatpush3.bf16.msra.mxu0 %v1967_v6 }
 0x333   : > { %1972 = vmatprep.subr.bf16.mxu0 %v1971_v43 }
 0x336   : > { %1974 = vmatpush3.bf16.msra.mxu0 %v1971_v43 }
 0x3ec   : > { %v923_v13 = vpop.f32.mrb[8].mxu0 }
 0x3ed   : > { %v924_v17 = vadd.f32 %v1490_v8, %v923_v13  ;;  %v1734_v18 = vpop.f32.mrb[9].mxu0 }
 0x3ef   : > { %v932_v21 = vadd.f32 %v931_v14, %v924_v17  ;;  %v939_v22 = vadd.f32 %v938_v12, %v924_v17  ;;  %v946_v23 = vadd.f32 %v945_v15, %v924_v17  ;;  %v953_v28 = vadd.f32 %v952_v19, %v924_v17 }
 0x3f0   : > { %v960_v31 = vadd.f32 %v959_v20, %v924_v17  ;;  %v967_v34 = vadd.f32 %v966_v27, %v924_v17  ;;  %v974_v36 = vadd.f32 %v973_v29, %v924_v17  ;;  %v981_v37 = vadd.f32 %v980_v32, %v924_v17 }
 0x3f1   : > { %v933_v25 = vmax.f32 %v932_v21, 0.0  ;;  %v940_v26 = vmax.f32 %v939_v22, 0.0  ;;  %v947_v30 = vmax.f32 %v946_v23, 0.0  ;;  %v954_v33 = vmax.f32 %v953_v28, 0.0 }
 0x3f2   : > { %v961_v35 = vmax.f32 %v960_v31, 0.0  ;;  %v968_v38 = vmax.f32 %v967_v34, 0.0  ;;  %v975_v39 = vmax.f32 %v974_v36, 0.0  ;;  %v982_v40 = vmax.f32 %v981_v37, 0.0 }
 0x3f3   : > { %1767 = vmatprep.mubr.f32.mxu1 %v933_v25 }
 0x3f4   : > { %1768 = vmatmul.mubr.f32.vlgmr.msra.gmra.mrb[8].mxu1 %v940_v26 }
 0x3f5   : > { %1770 = vmatprep.mubr.f32.mxu1 %v947_v30  ;;  %1983 = vmatpush3.bf16.msra.mxu1 %v2772_v50 }
 0x3f6   : > { %1976 = vmatprep.subr.bf16.mxu1 %v2777_v52 }
 0x3f8   : > { %1771 = vmatmul.mubr.f32.gmra.mrb[10].mxu1 %v954_v33 }
 0x3f9   : > { %1773 = vmatprep.mubr.f32.mxu1 %v961_v35  ;;  %1984 = vmatpush3.bf16.msra.mxu1 %v2777_v52 }
 0x3fa   : > { %1977 = vmatprep.subr.bf16.mxu1 %v2789_v55 }
 0x3fc   : > { %1774 = vmatmul.mubr.f32.gmra.mrb[12].mxu1 %v968_v38 }
 0x3fd   : > { %1776 = vmatprep.mubr.f32.mxu1 %v975_v39  ;;  %1985 = vmatpush3.bf16.msra.mxu1 %v2789_v55 }
 0x3fe   : > { %1978 = vmatprep.subr.bf16.mxu1 %v2799_v58 }
 0x400   : > { %1777 = vmatmul.mubr.f32.gmra.mrb[14].mxu1 %v982_v40 }
 0x401   : > { %1986 = vmatpush3.bf16.msra.mxu1 %v2799_v58 }
 0x402   : > { %1979 = vmatprep.subr.bf16.mxu1 %v2809_v61 }
 0x405   : > { %1987 = vmatpush3.bf16.msra.mxu1 %v2809_v61 }
 0x406   : > { %1980 = vmatprep.subr.bf16.mxu1 %v2819_v0 }
 0x409   : > { %1988 = vmatpush3.bf16.msra.mxu1 %v2819_v0 }
 0x40a   : > { %1981 = vmatprep.subr.bf16.mxu1 %v1967_v6 }
 0x40d   : > { %1989 = vmatpush3.bf16.msra.mxu1 %v1967_v6 }
 0x40e   : > { %1982 = vmatprep.subr.bf16.mxu1 %v1971_v43 }
 0x411   : > { %1990 = vmatpush3.bf16.msra.mxu1 %v1971_v43 }
 0x4c7   : > { %v1769_v45 = vpop.f32.mrb[8].mxu1 }
 0x4c8   : > { %v1075_v46 = vadd.f32 %v1769_v45, %v1491_v44  ;;  %v1069_v47 = vpop.f32.mrb[9].mxu1 }
 0x4c9   : > { %v1070_v48 = vadd.f32 %v1491_v44, %v1069_v47 }
 0x4ca   : > { %v1109_v51 = vmax.f32 %v1075_v46, 0.0 }
 0x4cb   : > { %v1108_v49 = vmax.f32 %v1070_v48, 0.0  ;;  %v1772_v50 = vpop.f32.mrb[10].mxu1 }
 0x4cc   : > { %v1085_v52 = vadd.f32 %v1772_v50, %v1491_v44  ;;  %v1079_v53 = vpop.f32.mrb[11].mxu1 }
 0x4cd   : > { %v1080_v54 = vadd.f32 %v1491_v44, %v1079_v53  ;;  %1811 = vmatprep.mubr.f32.mxu0 %v1108_v49 }
 0x4ce   : > { %1812 = vmatmul.mubr.f32.vlgmr.msra.gmra.mrb[10].mxu0 %v1109_v51  ;;  %v1111_v57 = vmax.f32 %v1085_v52, 0.0 }
 0x4cf   : > { %v1110_v55 = vmax.f32 %v1080_v54, 0.0  ;;  %v1775_v56 = vpop.f32.mrb[12].mxu1 }
 0x4d0   : > { %v1095_v58 = vadd.f32 %v1775_v56, %v1491_v44  ;;  %v1089_v59 = vpop.f32.mrb[13].mxu1 }
 0x4d1   : > { %v1090_v60 = vadd.f32 %v1491_v44, %v1089_v59  ;;  %1814 = vmatprep.mubr.f32.mxu0 %v1110_v55 }
 0x4d2   : > { %1815 = vmatmul.mubr.f32.gmra.mrb[12].mxu0 %v1111_v57  ;;  %v1113_v63 = vmax.f32 %v1095_v58, 0.0 }
 0x4d3   : > { %v1112_v61 = vmax.f32 %v1090_v60, 0.0  ;;  %v1778_v62 = vpop.f32.mrb[14].mxu1 }
 0x4d4   : > { %v1105_v0 = vadd.f32 %v1778_v62, %v1491_v44  ;;  %v1099_v1 = vpop.f32.mrb[15].mxu1 }
 0x4d5   : > { %v1100_v3 = vadd.f32 %v1491_v44, %v1099_v1  ;;  %1817 = vmatprep.mubr.f32.mxu1 %v1112_v61 }
 0x4d6   : > { %1818 = vmatmul.mubr.f32.vlgmr.msra.gmra.mrb[16].mxu1 %v1113_v63  ;;  %v1115_v7 = vmax.f32 %v1105_v0, 0.0 }
 0x4d7   : > { %v1114_v6 = vmax.f32 %v1100_v3, 0.0 }
 0x4d9   : > { %1820 = vmatprep.mubr.f32.mxu1 %v1114_v6 }
 0x4da   : > { %1821 = vmatmul.mubr.f32.gmra.mrb[18].mxu1 %v1115_v7 }
 0x5a1   : > { %v1813_v4 = vpop.f32.mrb[10].mxu0 }
 0x5a2   : > { %v1208_v10 = vadd.f32 %v1813_v4, %v1492_v9  ;;  %v1202_v11 = vpop.f32.mrb[11].mxu0 }
 0x5a3   : > { %v1203_v5 = vadd.f32 %v1492_v9, %v1202_v11 }
 0x5a4   : > { %1243 = vst.msk [vmem:[%s2860_s1 + $0x8] sm:$0xff] %vm1241_vm1, %v1208_v10 }
 0x5a5   : > { %1242 = vst.msk [vmem:[%s2860_s1] sm:$0xff] %vm1241_vm1, %v1203_v5  ;;  %v1816_v8 = vpop.f32.mrb[12].mxu0 }
 0x5a6   : > { %v1218_v12 = vadd.f32 %v1816_v8, %v1492_v9  ;;  %v1212_v13 = vpop.f32.mrb[13].mxu0 }
 0x5a7   : > { %v1213_v14 = vadd.f32 %v1492_v9, %v1212_v13 }
 0x5a8   : > { %1245 = vst.msk [vmem:[%s2860_s1 + $0x18] sm:$0xff] %vm1241_vm1, %v1218_v12 }
 0x5a9   : > { %1244 = vst.msk [vmem:[%s2860_s1 + $0x10] sm:$0xff] %vm1241_vm1, %v1213_v14  ;;  %v1819_v15 = vpop.f32.mrb[16].mxu1 }
 0x5aa   : > { %v1228_v16 = vadd.f32 %v1819_v15, %v1492_v9  ;;  %v1222_v17 = vpop.f32.mrb[17].mxu1 }
 0x5ab   : > { %v1223_v18 = vadd.f32 %v1492_v9, %v1222_v17  ;;  %1261 = sbr.rel (!%p2964_p6) target bundleno = 1466 (0x5ba), region = 80  ;;  %v1307_v24 = vld [vmem:[%s2860_s1 + $0x8] sm:$0xff] (%p2964_p6) }
 0x5ac   : > { %1247 = vst.msk [vmem:[%s2860_s1 + $0x28] sm:$0xff] %vm1241_vm1, %v1228_v16  ;;  %v1305_v23 = vld [vmem:[%s2860_s1] sm:$0xff] (%p2964_p6)  ;;  %1308 = vst [vmem:[%s1263_s20 + $0x10] sm:$0xff] (%p2964_p6), %v1307_v24 }
 0x5ad   : > { %1246 = vst.msk [vmem:[%s2860_s1 + $0x20] sm:$0xff] %vm1241_vm1, %v1223_v18  ;;  %v1822_v19 = vpop.f32.mrb[18].mxu1  ;;  %1306 = vst [vmem:[%s1263_s20] sm:$0xff] (%p2964_p6), %v1305_v23 }
 0x5ae   : > { %v1238_v20 = vadd.f32 %v1822_v19, %v1492_v9  ;;  %v1232_v21 = vpop.f32.mrb[19].mxu1 }
 0x5af   : > { %v1233_v22 = vadd.f32 %v1492_v9, %v1232_v21  ;;  %v1311_v26 = vld [vmem:[%s2860_s1 + $0x18] sm:$0xff] (%p2964_p6) }
 0x5b0   : > { %1249 = vst.msk [vmem:[%s2860_s1 + $0x38] sm:$0xff] %vm1241_vm1, %v1238_v20  ;;  %v1309_v25 = vld [vmem:[%s2860_s1 + $0x10] sm:$0xff] (%p2964_p6)  ;;  %1312 = vst [vmem:[%s1263_s20 + $0x30] sm:$0xff] (%p2964_p6), %v1311_v26 }
 0x5b1   : > { %1248 = vst.msk [vmem:[%s2860_s1 + $0x30] sm:$0xff] %vm1241_vm1, %v1233_v22  ;;  %1310 = vst [vmem:[%s1263_s20 + $0x20] sm:$0xff] (%p2964_p6), %v1309_v25 }
 0x5b3   : > { %v1315_v28 = vld [vmem:[%s2860_s1 + $0x28] sm:$0xff] }
 0x5b4   : > { %v1313_v27 = vld [vmem:[%s2860_s1 + $0x20] sm:$0xff]  ;;  %1316 = vst [vmem:[%s1263_s20 + $0x50] sm:$0xff] %v1315_v28 }
 0x5b5   : > { %1314 = vst [vmem:[%s1263_s20 + $0x40] sm:$0xff] %v1313_v27 }
 0x5b7   : > { %v1319_v2 = vld [vmem:[%s2860_s1 + $0x38] sm:$0xff] }
 0x5b8   : > { %v1317_v29 = vld [vmem:[%s2860_s1 + $0x30] sm:$0xff]  ;;  %1320 = vst [vmem:[%s1263_s20 + $0x70] sm:$0xff] %v1319_v2 }
 0x5b9   : > { %1318 = vst [vmem:[%s1263_s20 + $0x60] sm:$0xff] %v1317_v29 }
 0x5ba PF: > { %s1496_s24 = sshll.u32 %s2460_s19, 7  ;;  %s1333_s23 = sshll.u32 %s2760_s4, 4  ;;  %s1334_s23 = int_to_ptr.vmem [resolvable:$true] %s1333_s23 }
 0x5bb   : > { %s1331_s22 = scalar_lea.hbm %s2940_s10, %s1496_s24  ;;  %s2273_s26 = scalar_lea.vmem %s1334_s23, 128 }
 0x5bc   : > { %p2274_p10 = scmp.ne.s32.totalorder %s1334_s23, %s2273_s26  ;;  %p2965_p11 = scmp.ne.s32.totalorder %s2956_s29, 0 }
 0x5bd   : > { %s2383_s18 = smov [#allocation12]  }
 0x5be   : > { %p2275_p12 = pnand %p2274_p10, %p2965_p11  ;;  %s2277_s1 = sshll.u32 %s2383_s18, 4  ;;  %s2278_s1 = int_to_ptr.vmem [resolvable:$false] %s2277_s1 }
 0x5bf   : > { %s2279_s12 = scalar_lea.vmem %s2278_s1, 256  ;;  %p2280_p7 = scmp.lt.s32.totalorder %s1334_s23, %s2278_s1 }
 0x5c0   : > { %p2276_p5 = pneg %p2275_p12  ;;  %p2281_p4 = scmp.lt.s32.totalorder %s2279_s12, %s2273_s26 }
 0x5c2   : > { %p2282_p1 = por %p2281_p4, %p2280_p7 }
 0x5c4   : > { %p2283_p3 = pnand %p2282_p1, %p2276_p5 }
 0x5c6   : > { %2286 = shalt.err (!%p2283_p3)
}
 0x5c7   : > { %s2287_s19 = scalar_lea.hbm %s1331_s22, 128  ;;  %s2291_s20 = scalar_lea.hbm %s2940_s10, 256 }
 0x5c8   : > { %p2288_p9 = scmp.ne.s32.totalorder %s1331_s22, %s2287_s19  ;;  %p2292_p2 = scmp.lt.u32.totalorder %s1331_s22, %s2940_s10 }
 0x5c9   : > { %p2293_p8 = scmp.lt.u32.totalorder %s2291_s20, %s2287_s19  ;;  %p2295_p10 = scmp.lt.u32.totalorder %s2287_s19, %s1331_s22 }
 0x5ca   : > { %p2289_p13 = pnand %p2288_p9, %p2965_p11 }
 0x5cb   : > { %p2294_p6 = por %p2293_p8, %p2292_p2 }
 0x5cc   : > { %p2290_p0 = pneg %p2289_p13 }
 0x5cd   : > { %p2296_p12 = por %p2295_p10, %p2294_p6 }
 0x5cf   : > { %p2297_p5 = pnand %p2296_p12, %p2290_p0 }
 0x5d1   : > { %2300 = shalt.err (!%p2297_p5)
}
 0x5d2   : > { %2009 = dma.vmem_to_hbm [thread:$0]  (%p2965_p11), %s1334_s23, 128, %s1331_s22, %s1255_s21  }
 0x5d3 PF: > { %s1352_s28 = sand.u32 1, %s2335_s13   ;;  %p2966_p7 = scmp.ne.s32.totalorder %s2957_s17, 0 }
 0x5d4   : > { %p2967_p4 = scmp.ge.s32.totalorder %s2347_s16, 2  ;;  %s1353_s26 = scalar_lea.sflag [#allocation4], %s1352_s28 }
 0x5d6   : > { %p2029_p1 = pnand %p2967_p4, %p2966_p7 }
 0x5d8   : > { %2330 = dma.done.wait (!%p2029_p1), %s1353_s26, 128  }
 0x5d9   : > { %2332 = vsyncadd (!%p2029_p1), %s1353_s26, 4294967168  ;;  %p26_p3 = scmp.ge.s32.totalorder %s2581_s11, 4   ;;  %s2968_s13 = smov %s2339_s14 }
 0x5da   : > { %s2969_s14 = smov %s2343_s15  ;;  %s2970_s15 = smov %s2592_s30 }
 0x5db   : > { %s2971_s16 = smov %s2581_s11  ;;  %28 = sbr.rel (!%p26_p3) target bundleno = 11 (0xb), region = 167 }
 0x5e2   :  { %1358 = vsyncpa [#allocation3], 1 }
 0x5e3   :  { %1360 = vsyncpa [#allocation3 + $0x1], 1 }
 0x5e4   :  { %1361 = vsyncpa [#allocation6], 1 }
 0x5e5   :  { %1362 = vsyncpa [#allocation9], 1 }
 0x5e6   :  { %1363 = vsyncpa [#allocation4], 1 }
 0x5e7   :  { %1365 = vsyncpa [#allocation4 + $0x1], 1 }

</bundles_post_ra>
